<compile_context>
chip_gen: v7x
topology: tpu7x:2x2x1
jax: 0.10.0
libtpu: 0.0.40
codegen_flags: <defaults>
</compile_context>

<pallas_src>
import jax
import jax.numpy as jnp
from jax.experimental import pallas as pl
from jax.experimental.pallas import tpu as pltpu

IN_DIM = 1024
REP_DIM = 768
H1_DIM = 256
H2_DIM = 128
OUT_DIM = 101          # typical USDL score-distribution size; any value works
LANE = 128
_NEG_INF = -1e30       # padded-logit bias -> exp() underflows to exactly 0


def _round_up(x, m):
    return ((x + m - 1) // m) * m


def _mlp_block_kernel(x_ref,
                      w0_ref, b0_ref,
                      w1_ref, b1_ref,
                      w2_ref, b2_ref,
                      w3_ref, b3_ref,
                      probs_ref, rep_ref):
    # f32 tile arrives via the pipelined DMA; cast to bf16 here (MXU operands).
    x = x_ref[...].astype(jnp.bfloat16)                              # (tm, 1024)

    # layer_representation: 1024 -> 768 (bf16 MXU, f32 accumulate)
    rep = jnp.dot(x, w0_ref[...], preferred_element_type=jnp.float32) + b0_ref[...]
    rep_ref[...] = rep.astype(rep_ref.dtype)                         # pre-ReLU, as in PyTorch

    # x = ReLU(layer1(ReLU(rep)))
    h = jnp.maximum(rep, 0.0).astype(jnp.bfloat16)
    h = jnp.dot(h, w1_ref[...], preferred_element_type=jnp.float32) + b1_ref[...]
    h = jnp.maximum(h, 0.0).astype(jnp.bfloat16)

    # x = ReLU(layer2(x))
    h = jnp.dot(h, w2_ref[...], preferred_element_type=jnp.float32) + b2_ref[...]
    h = jnp.maximum(h, 0.0).astype(jnp.bfloat16)

    # output = softmax(layer3(x), dim=-1); padded lanes carry -1e30 bias -> exp == 0.
    logits = jnp.dot(h, w3_ref[...], preferred_element_type=jnp.float32) + b3_ref[...]
    m = jnp.max(logits, axis=-1, keepdims=True)
    e = jnp.exp(logits - m)
    denom = jnp.sum(e, axis=-1, keepdims=True)
    probs_ref[...] = (e / denom).astype(probs_ref.dtype)             # exact divide


def _choose_tm(B):
    if B >= 2048:
        return 512          # amortize ~0.35us/step overhead; working set ~12 MiB VMEM
    if B >= 512:
        return 256          # full 256-row MXU tiles; >= 2 grid steps
    if B >= 256:
        return 128
    if B >= 16:
        # v7x megacore: guarantee >= 2 parallel tiles so both TensorCores work.
        return _round_up((B + 1) // 2, 8)
    return _round_up(B, 8)  # tiny batch: one small tile (sublane multiple of 8)


def prepare_params(params):
    """One-time parameter prep (NOT per forward): bf16 weight casts, layer-3
    padded to a lane-dense 128-wide output with -1e30 bias on padded columns,
    f32 biases."""
    (w0, b0), (w1, b1), (w2, b2), (w3, b3) = params
    out_dim = w3.shape[1]
    out_pad = _round_up(out_dim, LANE)

    w0b = jnp.asarray(w0, jnp.bfloat16)
    w1b = jnp.asarray(w1, jnp.bfloat16)
    w2b = jnp.asarray(w2, jnp.bfloat16)
    w3b = jnp.zeros((H2_DIM, out_pad), jnp.bfloat16).at[:, :out_dim].set(
        jnp.asarray(w3, jnp.bfloat16))

    b0f = jnp.asarray(b0, jnp.float32).reshape(1, -1)
    b1f = jnp.asarray(b1, jnp.float32).reshape(1, -1)
    b2f = jnp.asarray(b2, jnp.float32).reshape(1, -1)
    b3p = jnp.full((1, out_pad), _NEG_INF, jnp.float32).at[:, :out_dim].set(
        jnp.asarray(b3, jnp.float32).reshape(1, -1))

    return {"weights": (w0b, b0f, w1b, b1f, w2b, b2f, w3b, b3p), "out_dim": out_dim}


def evaluator_forward(feats_avg, prepared, *, tm=None, rep_dtype=jnp.float32):
    """USDL Evaluator forward. Returns (probs, representation).

    `rep_dtype=jnp.bfloat16` halves the largest HBM stream on v6e; default f32
    matches the PyTorch module.
    """
    B, D = feats_avg.shape
    assert D == IN_DIM
    w0b, b0f, w1b, b1f, w2b, b2f, w3b, b3p = prepared["weights"]
    out_dim = prepared["out_dim"]
    out_pad = w3b.shape[1]

    if tm is None:
        tm = _choose_tm(B)
    num_tiles = pl.cdiv(B, tm)          # ragged last tile is masked by Pallas (no jnp.pad)

    x = feats_avg if feats_avg.dtype == jnp.float32 else feats_avg.astype(jnp.float32)

    def resident(shape):                # weights/biases: same block every grid step
        nd = len(shape)
        return pl.BlockSpec(shape, lambda i, _nd=nd: (0,) * _nd)

    grid_spec = pltpu.PrefetchScalarGridSpec(
        num_scalar_prefetch=0,
        grid=(num_tiles,),
        in_specs=[
            pl.BlockSpec((tm, IN_DIM), lambda i: (i, 0)),   # f32 feats tile; bf16 cast in-kernel
            resident(w0b.shape), resident(b0f.shape),
            resident(w1b.shape), resident(b1f.shape),
            resident(w2b.shape), resident(b2f.shape),
            resident(w3b.shape), resident(b3p.shape),
        ],
        out_specs=[
            pl.BlockSpec((tm, out_pad), lambda i: (i, 0)),  # probs (lane-dense 128)
            pl.BlockSpec((tm, REP_DIM), lambda i: (i, 0)),  # representation
        ],
    )

    probs, rep = pl.pallas_call(
        _mlp_block_kernel,
        out_shape=(
            jax.ShapeDtypeStruct((B, out_pad), jnp.float32),
            jax.ShapeDtypeStruct((B, REP_DIM), rep_dtype),
        ),
        grid_spec=grid_spec,
        compiler_params=pltpu.CompilerParams(
            dimension_semantics=("parallel",),
            vmem_limit_bytes=48 << 20,   # headroom under v7x's 64 MiB physical VMEM
        ),
    )(x, w0b, b0f, w1b, b1f, w2b, b2f, w3b, b3p)

    # Padded lanes of probs are exactly 0; slice back to the module's out_dim.
    return probs[:, :out_dim], rep


def init_params(key, out_dim=OUT_DIM):
    """Deterministic synthetic weights (shapes match the nn.Linear layers)."""
    dims = [(IN_DIM, REP_DIM), (REP_DIM, H1_DIM), (H1_DIM, H2_DIM), (H2_DIM, out_dim)]
    params = []
    for (fan_in, fan_out) in dims:
        key, kw, kb = jax.random.split(key, 3)
        bound = 1.0 / jnp.sqrt(fan_in)
        w = jax.random.uniform(kw, (fan_in, fan_out), jnp.float32, -bound, bound)
        b = jax.random.uniform(kb, (1, fan_out), jnp.float32, -bound, bound)
        params.append((w, b))
    return params


def _reference_forward(feats_avg, params):
    """Pure-JAX reference with the same bf16-matmul / f32-accumulate math."""
    (w0, b0), (w1, b1), (w2, b2), (w3, b3) = params

    def mm(a, w):
        return jnp.dot(a.astype(jnp.bfloat16), w.astype(jnp.bfloat16),
                       preferred_element_type=jnp.float32)

    rep = mm(feats_avg, w0) + b0
    h = jnp.maximum(rep, 0.0)
    h = jnp.maximum(mm(h, w1) + b1, 0.0)
    h = jnp.maximum(mm(h, w2) + b2, 0.0)
    logits = mm(h, w3) + b3
    probs = jax.nn.softmax(logits, axis=-1)
    return probs, rep


if __name__ == "__main__":
    key = jax.random.PRNGKey(0)
    k_in, k_in2, k_par = jax.random.split(key, 3)

    params = init_params(k_par, OUT_DIM)
    prepared = prepare_params(params)          # one-time: bf16 casts + lane padding

    # --- small exact-tile batch ---
    B = 8
    feats = jax.random.normal(k_in, (B, IN_DIM), jnp.float32)
    probs, rep = evaluator_forward(feats, prepared)
    jax.block_until_ready((probs, rep))
    assert probs.shape == (B, OUT_DIM) and rep.shape == (B, REP_DIM)

    ref_probs, ref_rep = _reference_forward(feats, params)
    assert jnp.allclose(probs, ref_probs, atol=2e-3, rtol=2e-3)
    assert jnp.allclose(rep, ref_rep, atol=2e-3, rtol=2e-3)
    assert jnp.allclose(jnp.sum(probs, axis=-1), 1.0, atol=1e-3)

    # --- multi-tile / ragged batch (exercises the >=2-tile v7x path) ---
    B2 = 24
    feats2 = jax.random.normal(k_in2, (B2, IN_DIM), jnp.float32)
    probs2, rep2 = evaluator_forward(feats2, prepared)
    jax.block_until_ready((probs2, rep2))
    assert probs2.shape == (B2, OUT_DIM) and rep2.shape == (B2, REP_DIM)

    ref_probs2, ref_rep2 = _reference_forward(feats2, params)
    assert jnp.allclose(probs2, ref_probs2, atol=2e-3, rtol=2e-3)
    assert jnp.allclose(rep2, ref_rep2, atol=2e-3, rtol=2e-3)
    assert jnp.allclose(jnp.sum(probs2, axis=-1), 1.0, atol=1e-3)

    print("KERNEL_OK")
</pallas_src>

<mosaic_0001>
module attributes {stable_mosaic.version = 11 : i64} {
  func.func @_mlp_block_kernel(%arg0: i32, %arg1: memref<8x1024xf32, #tpu.memory_space<vmem>>, %arg2: memref<1024x768xbf16, #tpu.memory_space<vmem>>, %arg3: memref<1x768xf32, #tpu.memory_space<vmem>>, %arg4: memref<768x256xbf16, #tpu.memory_space<vmem>>, %arg5: memref<1x256xf32, #tpu.memory_space<vmem>>, %arg6: memref<256x128xbf16, #tpu.memory_space<vmem>>, %arg7: memref<1x128xf32, #tpu.memory_space<vmem>>, %arg8: memref<128x128xbf16, #tpu.memory_space<vmem>>, %arg9: memref<1x128xf32, #tpu.memory_space<vmem>>, %arg10: memref<8x128xf32, #tpu.memory_space<vmem>>, %arg11: memref<8x768xf32, #tpu.memory_space<vmem>>) attributes {dimension_semantics = [#tpu.dimension_semantics<parallel>], iteration_bounds = array<i64: 1>, scalar_prefetch = 0 : i64, scratch_operands = 0 : i64, tpu.core_type = #tpu.core_type<tc>, window_params = [{transform_indices = @transform_0, window_bounds = array<i64: 8, 1024>}, {pipeline_mode = #tpu.pipeline_mode<synchronous>, transform_indices = @transform_1, window_bounds = array<i64: 1024, 768>}, {pipeline_mode = #tpu.pipeline_mode<synchronous>, transform_indices = @transform_2, window_bounds = array<i64: 1, 768>}, {pipeline_mode = #tpu.pipeline_mode<synchronous>, transform_indices = @transform_3, window_bounds = array<i64: 768, 256>}, {pipeline_mode = #tpu.pipeline_mode<synchronous>, transform_indices = @transform_4, window_bounds = array<i64: 1, 256>}, {pipeline_mode = #tpu.pipeline_mode<synchronous>, transform_indices = @transform_5, window_bounds = array<i64: 256, 128>}, {pipeline_mode = #tpu.pipeline_mode<synchronous>, transform_indices = @transform_6, window_bounds = array<i64: 1, 128>}, {pipeline_mode = #tpu.pipeline_mode<synchronous>, transform_indices = @transform_7, window_bounds = array<i64: 128, 128>}, {pipeline_mode = #tpu.pipeline_mode<synchronous>, transform_indices = @transform_8, window_bounds = array<i64: 1, 128>}, {transform_indices = @transform_9, window_bounds = array<i64: 8, 128>}, {transform_indices = @transform_10, window_bounds = array<i64: 8, 768>}]} {
    %c0 = arith.constant 0 : index
    %c0_0 = arith.constant 0 : index
    %0 = vector.load %arg1[%c0, %c0_0] : memref<8x1024xf32, #tpu.memory_space<vmem>>, vector<8x1024xf32>
    %1 = arith.truncf %0 : vector<8x1024xf32> to vector<8x1024xbf16>
    %c0_1 = arith.constant 0 : index
    %c0_2 = arith.constant 0 : index
    %2 = vector.load %arg2[%c0_1, %c0_2] : memref<1024x768xbf16, #tpu.memory_space<vmem>>, vector<1024x768xbf16>
    %cst = arith.constant dense<0.000000e+00> : vector<8x768xf32>
    %3 = tpu.matmul %1, %2, %cst {dimension_numbers = #tpu.dot_dimension_numbers<[1], [0], [0], [1], [0, 0, 1, 1], [], []>} : vector<8x1024xbf16>, vector<1024x768xbf16>, vector<8x768xf32> -> vector<8x768xf32>
    %c0_3 = arith.constant 0 : index
    %c0_4 = arith.constant 0 : index
    %4 = vector.load %arg3[%c0_3, %c0_4] : memref<1x768xf32, #tpu.memory_space<vmem>>, vector<1x768xf32>
    %5 = vector.broadcast %4 : vector<1x768xf32> to vector<8x768xf32>
    %6 = arith.addf %3, %5 : vector<8x768xf32>
    %c0_5 = arith.constant 0 : index
    %c0_6 = arith.constant 0 : index
    %7 = vector.load %arg11[%c0_5, %c0_6] : memref<8x768xf32, #tpu.memory_space<vmem>>, vector<8x768xf32>
    tpu.vector_store %arg11[%c0_5, %c0_6], %6 {strides = array<i32>} : memref<8x768xf32, #tpu.memory_space<vmem>>, vector<8x768xf32>,
    %cst_7 = arith.constant 0.000000e+00 : f32
    %8 = vector.broadcast %cst_7 : f32 to vector<8x768xf32>
    %9 = arith.maximumf %6, %8 : vector<8x768xf32>
    %10 = arith.truncf %9 : vector<8x768xf32> to vector<8x768xbf16>
    %c0_8 = arith.constant 0 : index
    %c0_9 = arith.constant 0 : index
    %11 = vector.load %arg4[%c0_8, %c0_9] : memref<768x256xbf16, #tpu.memory_space<vmem>>, vector<768x256xbf16>
    %cst_10 = arith.constant dense<0.000000e+00> : vector<8x256xf32>
    %12 = tpu.matmul %10, %11, %cst_10 {dimension_numbers = #tpu.dot_dimension_numbers<[1], [0], [0], [1], [0, 0, 1, 1], [], []>} : vector<8x768xbf16>, vector<768x256xbf16>, vector<8x256xf32> -> vector<8x256xf32>
    %c0_11 = arith.constant 0 : index
    %c0_12 = arith.constant 0 : index
    %13 = vector.load %arg5[%c0_11, %c0_12] : memref<1x256xf32, #tpu.memory_space<vmem>>, vector<1x256xf32>
    %14 = vector.broadcast %13 : vector<1x256xf32> to vector<8x256xf32>
    %15 = arith.addf %12, %14 : vector<8x256xf32>
    %cst_13 = arith.constant 0.000000e+00 : f32
    %16 = vector.broadcast %cst_13 : f32 to vector<8x256xf32>
    %17 = arith.maximumf %15, %16 : vector<8x256xf32>
    %18 = arith.truncf %17 : vector<8x256xf32> to vector<8x256xbf16>
    %c0_14 = arith.constant 0 : index
    %c0_15 = arith.constant 0 : index
    %19 = vector.load %arg6[%c0_14, %c0_15] : memref<256x128xbf16, #tpu.memory_space<vmem>>, vector<256x128xbf16>
    %cst_16 = arith.constant dense<0.000000e+00> : vector<8x128xf32>
    %20 = tpu.matmul %18, %19, %cst_16 {dimension_numbers = #tpu.dot_dimension_numbers<[1], [0], [0], [1], [0, 0, 1, 1], [], []>} : vector<8x256xbf16>, vector<256x128xbf16>, vector<8x128xf32> -> vector<8x128xf32>
    %c0_17 = arith.constant 0 : index
    %c0_18 = arith.constant 0 : index
    %21 = vector.load %arg7[%c0_17, %c0_18] : memref<1x128xf32, #tpu.memory_space<vmem>>, vector<1x128xf32>
    %22 = vector.broadcast %21 : vector<1x128xf32> to vector<8x128xf32>
    %23 = arith.addf %20, %22 : vector<8x128xf32>
    %cst_19 = arith.constant 0.000000e+00 : f32
    %24 = vector.broadcast %cst_19 : f32 to vector<8x128xf32>
    %25 = arith.maximumf %23, %24 : vector<8x128xf32>
    %26 = arith.truncf %25 : vector<8x128xf32> to vector<8x128xbf16>
    %c0_20 = arith.constant 0 : index
    %c0_21 = arith.constant 0 : index
    %27 = vector.load %arg8[%c0_20, %c0_21] : memref<128x128xbf16, #tpu.memory_space<vmem>>, vector<128x128xbf16>
    %cst_22 = arith.constant dense<0.000000e+00> : vector<8x128xf32>
    %28 = tpu.matmul %26, %27, %cst_22 {dimension_numbers = #tpu.dot_dimension_numbers<[1], [0], [0], [1], [0, 0, 1, 1], [], []>} : vector<8x128xbf16>, vector<128x128xbf16>, vector<8x128xf32> -> vector<8x128xf32>
    %c0_23 = arith.constant 0 : index
    %c0_24 = arith.constant 0 : index
    %29 = vector.load %arg9[%c0_23, %c0_24] : memref<1x128xf32, #tpu.memory_space<vmem>>, vector<1x128xf32>
    %30 = vector.broadcast %29 : vector<1x128xf32> to vector<8x128xf32>
    %31 = arith.addf %28, %30 : vector<8x128xf32>
    %cst_25 = arith.constant dense<0xFF800000> : vector<8xf32>
    %32 = vector.multi_reduction <maximumf>, %31, %cst_25 [1] : vector<8x128xf32> to vector<8xf32>
    %33 = vector.shape_cast %32 : vector<8xf32> to vector<8x1xf32>
    %34 = vector.broadcast %33 : vector<8x1xf32> to vector<8x128xf32>
    %35 = arith.subf %31, %34 : vector<8x128xf32>
    %36 = math.exp %35 : vector<8x128xf32>
    %cst_26 = arith.constant dense<0.000000e+00> : vector<8xf32>
    %37 = vector.multi_reduction <add>, %36, %cst_26 [1] : vector<8x128xf32> to vector<8xf32>
    %38 = vector.shape_cast %37 : vector<8xf32> to vector<8x1xf32>
    %39 = vector.broadcast %38 : vector<8x1xf32> to vector<8x128xf32>
    %40 = arith.divf %36, %39 : vector<8x128xf32>
    %c0_27 = arith.constant 0 : index
    %c0_28 = arith.constant 0 : index
    %41 = vector.load %arg10[%c0_27, %c0_28] : memref<8x128xf32, #tpu.memory_space<vmem>>, vector<8x128xf32>
    tpu.vector_store %arg10[%c0_27, %c0_28], %40 {strides = array<i32>} : memref<8x128xf32, #tpu.memory_space<vmem>>, vector<8x128xf32>,
    return
  }
  func.func @transform_0(%arg0: i32) -> (i32, i32) {
    %c0_i32 = arith.constant 0 : i32
    %c0_i32_0 = arith.constant 0 : i32
    return %arg0, %c0_i32 : i32, i32
  }
  func.func @transform_1(%arg0: i32) -> (i32, i32) {
    %c0_i32 = arith.constant 0 : i32
    %c0_i32_0 = arith.constant 0 : i32
    %c0_i32_1 = arith.constant 0 : i32
    return %c0_i32, %c0_i32_0 : i32, i32
  }
  func.func @transform_2(%arg0: i32) -> (i32, i32) {
    %c0_i32 = arith.constant 0 : i32
    %c0_i32_0 = arith.constant 0 : i32
    %c0_i32_1 = arith.constant 0 : i32
    return %c0_i32, %c0_i32_0 : i32, i32
  }
  func.func @transform_3(%arg0: i32) -> (i32, i32) {
    %c0_i32 = arith.constant 0 : i32
    %c0_i32_0 = arith.constant 0 : i32
    %c0_i32_1 = arith.constant 0 : i32
    return %c0_i32, %c0_i32_0 : i32, i32
  }
  func.func @transform_4(%arg0: i32) -> (i32, i32) {
    %c0_i32 = arith.constant 0 : i32
    %c0_i32_0 = arith.constant 0 : i32
    %c0_i32_1 = arith.constant 0 : i32
    return %c0_i32, %c0_i32_0 : i32, i32
  }
  func.func @transform_5(%arg0: i32) -> (i32, i32) {
    %c0_i32 = arith.constant 0 : i32
    %c0_i32_0 = arith.constant 0 : i32
    %c0_i32_1 = arith.constant 0 : i32
    return %c0_i32, %c0_i32_0 : i32, i32
  }
  func.func @transform_6(%arg0: i32) -> (i32, i32) {
    %c0_i32 = arith.constant 0 : i32
    %c0_i32_0 = arith.constant 0 : i32
    %c0_i32_1 = arith.constant 0 : i32
    return %c0_i32, %c0_i32_0 : i32, i32
  }
  func.func @transform_7(%arg0: i32) -> (i32, i32) {
    %c0_i32 = arith.constant 0 : i32
    %c0_i32_0 = arith.constant 0 : i32
    %c0_i32_1 = arith.constant 0 : i32
    return %c0_i32, %c0_i32_0 : i32, i32
  }
  func.func @transform_8(%arg0: i32) -> (i32, i32) {
    %c0_i32 = arith.constant 0 : i32
    %c0_i32_0 = arith.constant 0 : i32
    %c0_i32_1 = arith.constant 0 : i32
    return %c0_i32, %c0_i32_0 : i32, i32
  }
  func.func @transform_9(%arg0: i32) -> (i32, i32) {
    %c0_i32 = arith.constant 0 : i32
    %c0_i32_0 = arith.constant 0 : i32
    return %arg0, %c0_i32 : i32, i32
  }
  func.func @transform_10(%arg0: i32) -> (i32, i32) {
    %c0_i32 = arith.constant 0 : i32
    %c0_i32_0 = arith.constant 0 : i32
    return %arg0, %c0_i32 : i32, i32
  }
}

</mosaic_0001>

<bundles_post_ra>
// kernel: tpu_custom_call.1
= control target key start
LH: loop header
LB: loop body
LE: loop exit
PB: predicated region body
PF: predicated region fallthrough
CT: control target
= control target key end

     0   :  { %16 = vsyncpa [#allocation3], 0  ;;  %s5963_s0 = inlined_call_operand.hbm [shape: f32[8,1024], index: 0, kind: input, shape index: {}]   ;;  %s5964_s1 = inlined_call_operand.hbm [shape: bf16[1024,768], index: 1, kind: input, shape index: {}]   ;;  %s5965_s2 = inlined_call_operand.hbm [shape: f32[1,768], index: 2, kind: input, shape index: {}]   ;;  %s5966_s3 = inlined_call_operand.hbm [shape: bf16[768,256], index: 3, kind: input, shape index: {}]   ;;  %s5967_s4 = inlined_call_operand.hbm [shape: f32[1,256], index: 4, kind: input, shape index: {}]   ;;  %s5968_s5 = inlined_call_operand.hbm [shape: bf16[256,128], index: 5, kind: input, shape index: {}]   ;;  %s5969_s6 = inlined_call_operand.hbm [shape: f32[1,128], index: 6, kind: input, shape index: {}]   ;;  %s5970_s7 = inlined_call_operand.hbm [shape: bf16[128,128], index: 7, kind: input, shape index: {}]   ;;  %s5971_s8 = inlined_call_operand.hbm [shape: f32[1,128], index: 8, kind: input, shape index: {}]   ;;  %s5972_s9 = inlined_call_operand.hbm [shape: f32[8,128], index: 9, kind: output, shape index: {0}]   ;;  %s5973_s10 = inlined_call_operand.hbm [shape: f32[8,768], index: 10, kind: output, shape index: {1}]  }
   0x1   :  { %17 = vsyncpa [#allocation6], 0 }
   0x2   :  { %18 = vsyncpa [#allocation9], 0 }
   0x3   :  { %19 = vsyncpa [#allocation12], 0 }
   0x4   :  { %20 = vsyncpa [#allocation15], 0 }
   0x5   :  { %21 = vsyncpa [#allocation4], 0 }
   0x6   :  { %22 = vsyncpa [#allocation19], 0  ;;  %s5689_s13 = smov [#allocation5]   ;;  %s5433_s17 = scalar_lea.hbm %s5964_s1, 49152 }
   0x7   :  { %s38_s14 = sshll.u32 %s5689_s13, 4  ;;  %p5434_p0 = scmp.ne.s32.totalorder %s5964_s1, %s5433_s17  ;;  %s39_s14 = int_to_ptr.vmem [resolvable:$true] %s38_s14 }
   0x8   :  { %p5437_p1 = scmp.lt.u32.totalorder %s5433_s17, %s5964_s1 }
   0xa   :  { %p5439_p2 = pnand %p5437_p1, %p5434_p0 }
   0xc   :  { %5442 = shalt.err (!%p5439_p2)
}
   0xd   :  { %s5443_s22 = scalar_lea.vmem %s39_s14, 49152  ;;  %p5448_p4 = scmp.lt.s32.totalorder %s39_s14, %s39_s14 }
   0xe   :  { %p5444_p3 = scmp.ne.s32.totalorder %s39_s14, %s5443_s22  ;;  %p5449_p5 = scmp.lt.s32.totalorder %s5443_s22, %s5443_s22 }
  0x10   :  { %p5450_p6 = por %p5449_p5, %p5448_p4 }
  0x12   :  { %p5451_p7 = pnand %p5450_p6, %p5444_p3 }
  0x14   :  { %5454 = shalt.err (!%p5451_p7)
}
  0x15   :  { %s5690_s23 = smov 384   ;;  %s5691_s24 = smov 24  }
  0x16   :  { %44 = dma.hbm_to_vmem [thread:$0]  %s5964_s1, 49152, %s39_s14, [#allocation6], %s5690_s23, %s5690_s23, %s5691_s24  }
  0x17   :  { %s5692_s27 = smov [#allocation8]   ;;  %s5455_s11 = scalar_lea.hbm %s5966_s3, 12288 }
  0x18   :  { %s60_s28 = sshll.u32 %s5692_s27, 4  ;;  %p5456_p8 = scmp.ne.s32.totalorder %s5966_s3, %s5455_s11  ;;  %s61_s28 = int_to_ptr.vmem [resolvable:$true] %s60_s28 }
  0x19   :  { %p5459_p9 = scmp.lt.u32.totalorder %s5455_s11, %s5966_s3 }
  0x1b   :  { %p5461_p10 = pnand %p5459_p9, %p5456_p8 }
  0x1d   :  { %5464 = shalt.err (!%p5461_p10)
}
  0x1e   :  { %s5465_s17 = scalar_lea.vmem %s61_s28, 12288  ;;  %p5470_p12 = scmp.lt.s32.totalorder %s61_s28, %s61_s28 }
  0x1f   :  { %p5466_p11 = scmp.ne.s32.totalorder %s61_s28, %s5465_s17  ;;  %p5471_p13 = scmp.lt.s32.totalorder %s5465_s17, %s5465_s17 }
  0x21   :  { %p5472_p0 = por %p5471_p13, %p5470_p12 }
  0x23   :  { %p5473_p1 = pnand %p5472_p0, %p5466_p11 }
  0x25   :  { %5476 = shalt.err (!%p5473_p1)
}
  0x26   :  { %s5693_s1 = smov 128   ;;  %s5694_s14 = smov 8  }
  0x27   :  { %66 = dma.hbm_to_vmem [thread:$0]  %s5966_s3, 12288, %s61_s28, [#allocation9], %s5693_s1, %s5693_s1, %s5694_s14  }
  0x28   :  { %s5695_s20 = smov [#allocation11]   ;;  %s5477_s24 = scalar_lea.hbm %s5968_s5, 2048 }
  0x29   :  { %s82_s21 = sshll.u32 %s5695_s20, 4  ;;  %p5478_p2 = scmp.ne.s32.totalorder %s5968_s5, %s5477_s24  ;;  %s83_s21 = int_to_ptr.vmem [resolvable:$true] %s82_s21 }
  0x2a   :  { %p5481_p3 = scmp.lt.u32.totalorder %s5477_s24, %s5968_s5 }
  0x2c   :  { %p5483_p4 = pnand %p5481_p3, %p5478_p2 }
  0x2e   :  { %5486 = shalt.err (!%p5483_p4)
}
  0x2f   :  { %s5487_s30 = scalar_lea.vmem %s83_s21, 2048  ;;  %p5492_p6 = scmp.lt.s32.totalorder %s83_s21, %s83_s21 }
  0x30   :  { %p5488_p5 = scmp.ne.s32.totalorder %s83_s21, %s5487_s30  ;;  %p5493_p7 = scmp.lt.s32.totalorder %s5487_s30, %s5487_s30 }
  0x32   :  { %p5494_p8 = por %p5493_p7, %p5492_p6 }
  0x34   :  { %p5495_p9 = pnand %p5494_p8, %p5488_p5 }
  0x36   :  { %5498 = shalt.err (!%p5495_p9)
}
  0x37   :  { %s5696_s3 = smov 64   ;;  %s5697_s28 = smov 4  }
  0x38   :  { %88 = dma.hbm_to_vmem [thread:$0]  %s5968_s5, 2048, %s83_s21, [#allocation12], %s5696_s3, %s5696_s3, %s5697_s28  }
  0x39   :  { %s5698_s13 = smov [#allocation14]   ;;  %s5699_s16 = smov [#allocation2]  }
  0x3a   :  { %s104_s15 = sshll.u32 %s5698_s13, 4  ;;  %s29_s17 = sshll.u32 %s5699_s16, 4  ;;  %s105_s15 = int_to_ptr.vmem [resolvable:$true] %s104_s15  ;;  %s30_s17 = int_to_ptr.vmem [resolvable:$true] %s29_s17 }
  0x3b   :  { %s5499_s18 = scalar_lea.hbm %s5970_s7, 1024 }
  0x3c   :  { %p5500_p10 = scmp.ne.s32.totalorder %s5970_s7, %s5499_s18  ;;  %p5503_p11 = scmp.lt.u32.totalorder %s5499_s18, %s5970_s7 }
  0x3e   :  { %p5505_p12 = pnand %p5503_p11, %p5500_p10 }
  0x40   :  { %5508 = shalt.err (!%p5505_p12)
}
  0x41   :  { %s5509_s5 = scalar_lea.vmem %s105_s15, 1024  ;;  %p5514_p0 = scmp.lt.s32.totalorder %s105_s15, %s105_s15 }
  0x42   :  { %p5510_p13 = scmp.ne.s32.totalorder %s105_s15, %s5509_s5  ;;  %p5515_p1 = scmp.lt.s32.totalorder %s5509_s5, %s5509_s5 }
  0x44   :  { %p5516_p2 = por %p5515_p1, %p5514_p0 }
  0x46   :  { %p5517_p3 = pnand %p5516_p2, %p5510_p13 }
  0x48   :  { %5520 = shalt.err (!%p5517_p3)
}
  0x49   :  { %110 = dma.hbm_to_vmem [thread:$0]  %s5970_s7, 1024, %s105_s15, [#allocation15], %s5696_s3, %s5696_s3, %s5697_s28  }
  0x4a   :  { %s5521_s27 = scalar_lea.hbm %s5963_s0, 1024 }
  0x4b   :  { %p5522_p4 = scmp.ne.s32.totalorder %s5963_s0, %s5521_s27  ;;  %p5525_p5 = scmp.lt.u32.totalorder %s5521_s27, %s5963_s0 }
  0x4d   :  { %p5527_p6 = pnand %p5525_p5, %p5522_p4 }
  0x4f   :  { %5530 = shalt.err (!%p5527_p6)
}
  0x50   :  { %s5531_s13 = scalar_lea.vmem %s30_s17, 1024  ;;  %p5536_p8 = scmp.lt.s32.totalorder %s30_s17, %s30_s17 }
  0x51   :  { %p5532_p7 = scmp.ne.s32.totalorder %s30_s17, %s5531_s13  ;;  %p5537_p9 = scmp.lt.s32.totalorder %s5531_s13, %s5531_s13 }
  0x53   :  { %p5538_p10 = por %p5537_p9, %p5536_p8 }
  0x55   :  { %p5539_p11 = pnand %p5538_p10, %p5532_p7 }
  0x57   :  { %5542 = shalt.err (!%p5539_p11)
}
  0x58   :  { %32 = dma.hbm_to_vmem [thread:$0]  %s5963_s0, 1024, %s30_s17, [#allocation3]  }
  0x59   :  { %s5700_s28 = smov [#allocation7]   ;;  %s5701_s16 = smov [#allocation10]  }
  0x5a   :  { %s51_s15 = sshll.u32 %s5700_s28, 4  ;;  %s73_s1 = sshll.u32 %s5701_s16, 4  ;;  %s52_s15 = int_to_ptr.vmem [resolvable:$true] %s51_s15  ;;  %s74_s1 = int_to_ptr.vmem [resolvable:$true] %s73_s1 }
  0x5b   :  { %s5543_s19 = scalar_lea.hbm %s5965_s2, 96 }
  0x5c   :  { %p5544_p12 = scmp.ne.s32.totalorder %s5965_s2, %s5543_s19  ;;  %p5547_p13 = scmp.lt.u32.totalorder %s5543_s19, %s5965_s2 }
  0x5e   :  { %p5549_p0 = pnand %p5547_p13, %p5544_p12 }
  0x60   :  { %5552 = shalt.err (!%p5549_p0)
}
  0x61   :  { %s5553_s0 = scalar_lea.vmem %s52_s15, 96  ;;  %p5558_p2 = scmp.lt.s32.totalorder %s52_s15, %s52_s15 }
  0x62   :  { %p5554_p1 = scmp.ne.s32.totalorder %s52_s15, %s5553_s0  ;;  %p5559_p3 = scmp.lt.s32.totalorder %s5553_s0, %s5553_s0 }
  0x64   :  { %p5560_p4 = por %p5559_p3, %p5558_p2 }
  0x66   :  { %p5561_p5 = pnand %p5560_p4, %p5554_p1 }
  0x68   :  { %5564 = shalt.err (!%p5561_p5)
}
  0x69   :  { %54 = dma.hbm_to_vmem [thread:$0]  %s5965_s2, 96, %s52_s15, [#allocation6]  }
  0x6a   :  { %s5565_s26 = scalar_lea.hbm %s5967_s4, 32 }
  0x6b   :  { %p5566_p6 = scmp.ne.s32.totalorder %s5967_s4, %s5565_s26  ;;  %p5569_p7 = scmp.lt.u32.totalorder %s5565_s26, %s5967_s4 }
  0x6d   :  { %p5571_p8 = pnand %p5569_p7, %p5566_p6 }
  0x6f   :  { %5574 = shalt.err (!%p5571_p8)
}
  0x70   :  { %s5575_s12 = scalar_lea.vmem %s74_s1, 32  ;;  %p5580_p10 = scmp.lt.s32.totalorder %s74_s1, %s74_s1 }
  0x71   :  { %p5576_p9 = scmp.ne.s32.totalorder %s74_s1, %s5575_s12  ;;  %p5581_p11 = scmp.lt.s32.totalorder %s5575_s12, %s5575_s12 }
  0x73   :  { %p5582_p12 = por %p5581_p11, %p5580_p10 }
  0x75   :  { %p5583_p13 = pnand %p5582_p12, %p5576_p9 }
  0x77   :  { %5586 = shalt.err (!%p5583_p13)
}
  0x78   :  { %76 = dma.hbm_to_vmem [thread:$0]  %s5967_s4, 32, %s74_s1, [#allocation9]  }
  0x79   :  { %s5702_s7 = smov [#allocation13]   ;;  %s5703_s28 = smov [#allocation16]  }
  0x7a   :  { %s95_s3 = sshll.u32 %s5702_s7, 4  ;;  %s117_s15 = sshll.u32 %s5703_s28, 4  ;;  %s96_s3 = int_to_ptr.vmem [resolvable:$true] %s95_s3  ;;  %s118_s15 = int_to_ptr.vmem [resolvable:$true] %s117_s15 }
  0x7b   :  { %s5587_s18 = scalar_lea.hbm %s5969_s6, 16 }
  0x7c   :  { %p5588_p0 = scmp.ne.s32.totalorder %s5969_s6, %s5587_s18  ;;  %p5591_p1 = scmp.lt.u32.totalorder %s5587_s18, %s5969_s6 }
  0x7e   :  { %p5593_p2 = pnand %p5591_p1, %p5588_p0 }
  0x80   :  { %5596 = shalt.err (!%p5593_p2)
}
  0x81   :  { %s5597_s4 = scalar_lea.vmem %s96_s3, 16  ;;  %s5601_s1 = scalar_lea.vmem %s96_s3, 32 }
  0x82   :  { %p5598_p3 = scmp.ne.s32.totalorder %s96_s3, %s5597_s4  ;;  %p5602_p4 = scmp.lt.s32.totalorder %s96_s3, %s96_s3 }
  0x83   :  { %p5603_p5 = scmp.lt.s32.totalorder %s5601_s1, %s5597_s4 }
  0x85   :  { %p5604_p6 = por %p5603_p5, %p5602_p4 }
  0x87   :  { %p5605_p7 = pnand %p5604_p6, %p5598_p3 }
  0x89   :  { %5608 = shalt.err (!%p5605_p7)
}
  0x8a   :  { %98 = dma.hbm_to_vmem [thread:$0]  %s5969_s6, 16, %s96_s3, [#allocation12]  }
  0x8b   :  { %s5609_s24 = scalar_lea.hbm %s5971_s8, 16 }
  0x8c   :  { %p5610_p8 = scmp.ne.s32.totalorder %s5971_s8, %s5609_s24  ;;  %p5613_p9 = scmp.lt.u32.totalorder %s5609_s24, %s5971_s8 }
  0x8e   :  { %p5615_p10 = pnand %p5613_p9, %p5610_p8 }
  0x90   :  { %5618 = shalt.err (!%p5615_p10)
}
  0x91   :  { %s5619_s30 = scalar_lea.vmem %s118_s15, 16  ;;  %s5623_s11 = scalar_lea.vmem %s118_s15, 32 }
  0x92   :  { %p5620_p11 = scmp.ne.s32.totalorder %s118_s15, %s5619_s30  ;;  %p5624_p12 = scmp.lt.s32.totalorder %s118_s15, %s118_s15 }
  0x93   :  { %p5625_p13 = scmp.lt.s32.totalorder %s5623_s11, %s5619_s30 }
  0x95   :  { %p5626_p0 = por %p5625_p13, %p5624_p12 }
  0x97   :  { %p5627_p1 = pnand %p5626_p0, %p5620_p11 }
  0x99   :  { %5630 = shalt.err (!%p5627_p1)
}
  0x9a   :  { %120 = dma.hbm_to_vmem [thread:$0]  %s5971_s8, 16, %s118_s15, [#allocation15]  }
  0x9b   :  { %5675 = dma.done.wait [#allocation3], 1024  }
  0x9c   :  { %5676 = vsyncadd [#allocation3], 4294966272 }
  0x9d   :  { %5677 = dma.done.wait [#allocation6], 49248  }
  0x9e   :  { %5678 = vsyncadd [#allocation6], 4294918048 }
  0x9f   :  { %5679 = dma.done.wait [#allocation9], 12320  }
  0xa0   :  { %5680 = vsyncadd [#allocation9], 4294954976 }
  0xa1   :  { %5681 = dma.done.wait [#allocation12], 2064  }
  0xa2   :  { %5682 = vsyncadd [#allocation12], 4294965232 }
  0xa3   :  { %5683 = dma.done.wait [#allocation15], 1040  }
  0xa4   :  { %5684 = vsyncadd [#allocation15], 4294966256  ;;  %v4685_v0 = vld [vmem:[#allocation5 + $0x4] ss:$24 sps:$4 sm:$0xff]   ;;  %v4689_v2 = vld [vmem:[#allocation5] ss:$24 sps:$4 sm:$0xff]  }
  0xa5   :  { %v4687_v1 = vld [vmem:[#allocation5 + $0xc] ss:$24 sps:$4 sm:$0xff]   ;;  %2501 = vmatprep.subr.bf16.mxu0 %v4685_v0  ;;  %v4690_v3 = vld [vmem:[#allocation5 + $0x8] ss:$24 sps:$4 sm:$0xff]   ;;  %v4693_v5 = vld [vmem:[#allocation5 + $0x3c] ss:$24 sps:$4 sm:$0xff]  }
  0xa6   :  { %2665 = vmatprep.subr.bf16.mxu1 %v4687_v1  ;;  %v4691_v4 = vld [vmem:[#allocation5 + $0x34] ss:$24 sps:$4 sm:$0xff]   ;;  %2502 = vmatpush1.bf16.msra.mxu0 %v4689_v2  ;;  %v4695_v6 = vld [vmem:[#allocation5 + $0x30] ss:$24 sps:$4 sm:$0xff]   ;;  %v4697_v8 = vld [vmem:[#allocation5 + $0x64] ss:$24 sps:$4 sm:$0xff]  }
  0xa7   :  { %2666 = vmatpush1.bf16.msra.mxu1 %v4690_v3  ;;  %2503 = vmatprep.subr.bf16.mxu0 %v4691_v4  ;;  %v4696_v7 = vld [vmem:[#allocation5 + $0x38] ss:$24 sps:$4 sm:$0xff]   ;;  %v4699_v9 = vld [vmem:[#allocation5 + $0x6c] ss:$24 sps:$4 sm:$0xff]   ;;  %v4702_v11 = vld [vmem:[#allocation5 + $0x68] ss:$24 sps:$4 sm:$0xff]  }
  0xa8   :  { %2667 = vmatprep.subr.bf16.mxu1 %v4693_v5  ;;  %v4701_v10 = vld [vmem:[#allocation5 + $0x60] ss:$24 sps:$4 sm:$0xff]   ;;  %v4703_v12 = vld [vmem:[#allocation5 + $0x94] ss:$24 sps:$4 sm:$0xff]   ;;  %v4707_v14 = vld [vmem:[#allocation5 + $0x90] ss:$24 sps:$4 sm:$0xff]  }
  0xa9   :  { %v4705_v13 = vld [vmem:[#allocation5 + $0x9c] ss:$24 sps:$4 sm:$0xff]   ;;  %v4708_v15 = vld [vmem:[#allocation5 + $0x98] ss:$24 sps:$4 sm:$0xff]   ;;  %v4711_v17 = vld [vmem:[#allocation5 + $0xcc] ss:$24 sps:$4 sm:$0xff]  }
  0xaa   :  { %2504 = vmatpush1.bf16.msra.mxu0 %v4695_v6  ;;  %v4709_v16 = vld [vmem:[#allocation5 + $0xc4] ss:$24 sps:$4 sm:$0xff]   ;;  %v4713_v18 = vld [vmem:[#allocation5 + $0xc0] ss:$24 sps:$4 sm:$0xff]   ;;  %v4715_v20 = vld [vmem:[#allocation5 + $0xf4] ss:$24 sps:$4 sm:$0xff]  }
  0xab   :  { %2668 = vmatpush1.bf16.msra.mxu1 %v4696_v7  ;;  %2505 = vmatprep.subr.bf16.mxu0 %v4697_v8  ;;  %v4714_v19 = vld [vmem:[#allocation5 + $0xc8] ss:$24 sps:$4 sm:$0xff]   ;;  %v4717_v21 = vld [vmem:[#allocation5 + $0xfc] ss:$24 sps:$4 sm:$0xff]   ;;  %v4720_v23 = vld [vmem:[#allocation5 + $0xf8] ss:$24 sps:$4 sm:$0xff]  }
  0xac   :  { %2669 = vmatprep.subr.bf16.mxu1 %v4699_v9  ;;  %v4719_v22 = vld [vmem:[#allocation5 + $0xf0] ss:$24 sps:$4 sm:$0xff]   ;;  %v4721_v24 = vld [vmem:[#allocation5 + $0x124] ss:$24 sps:$4 sm:$0xff]   ;;  %v4725_v26 = vld [vmem:[#allocation5 + $0x120] ss:$24 sps:$4 sm:$0xff]  }
  0xad   :  { %v4723_v25 = vld [vmem:[#allocation5 + $0x12c] ss:$24 sps:$4 sm:$0xff]   ;;  %v4726_v27 = vld [vmem:[#allocation5 + $0x128] ss:$24 sps:$4 sm:$0xff]   ;;  %v4729_v29 = vld [vmem:[#allocation5 + $0x15c] ss:$24 sps:$4 sm:$0xff]  }
  0xae   :  { %2506 = vmatpush1.bf16.msra.mxu0 %v4701_v10  ;;  %v4727_v28 = vld [vmem:[#allocation5 + $0x154] ss:$24 sps:$4 sm:$0xff]   ;;  %v4731_v30 = vld [vmem:[#allocation5 + $0x150] ss:$24 sps:$4 sm:$0xff]   ;;  %v4733_v32 = vld [vmem:[#allocation5 + $0x184] ss:$24 sps:$4 sm:$0xff]  }
  0xaf   :  { %2670 = vmatpush1.bf16.msra.mxu1 %v4702_v11  ;;  %2507 = vmatprep.subr.bf16.mxu0 %v4703_v12  ;;  %v4732_v31 = vld [vmem:[#allocation5 + $0x158] ss:$24 sps:$4 sm:$0xff]   ;;  %v4735_v33 = vld [vmem:[#allocation5 + $0x18c] ss:$24 sps:$4 sm:$0xff]   ;;  %v4738_v35 = vld [vmem:[#allocation5 + $0x188] ss:$24 sps:$4 sm:$0xff]  }
  0xb0   :  { %2671 = vmatprep.subr.bf16.mxu1 %v4705_v13  ;;  %v4737_v34 = vld [vmem:[#allocation5 + $0x180] ss:$24 sps:$4 sm:$0xff]   ;;  %v4739_v36 = vld [vmem:[#allocation5 + $0x1b4] ss:$24 sps:$4 sm:$0xff]   ;;  %v4743_v38 = vld [vmem:[#allocation5 + $0x1b0] ss:$24 sps:$4 sm:$0xff]  }
  0xb1   :  { %v4741_v37 = vld [vmem:[#allocation5 + $0x1bc] ss:$24 sps:$4 sm:$0xff]   ;;  %v4744_v39 = vld [vmem:[#allocation5 + $0x1b8] ss:$24 sps:$4 sm:$0xff]   ;;  %v4747_v41 = vld [vmem:[#allocation5 + $0x1ec] ss:$24 sps:$4 sm:$0xff]  }
  0xb2   :  { %2508 = vmatpush1.bf16.msra.mxu0 %v4707_v14  ;;  %v4745_v40 = vld [vmem:[#allocation5 + $0x1e4] ss:$24 sps:$4 sm:$0xff]   ;;  %v4749_v42 = vld [vmem:[#allocation5 + $0x1e0] ss:$24 sps:$4 sm:$0xff]   ;;  %v4751_v44 = vld [vmem:[#allocation5 + $0x214] ss:$24 sps:$4 sm:$0xff]  }
  0xb3   :  { %2672 = vmatpush1.bf16.msra.mxu1 %v4708_v15  ;;  %2509 = vmatprep.subr.bf16.mxu0 %v4709_v16  ;;  %v4750_v43 = vld [vmem:[#allocation5 + $0x1e8] ss:$24 sps:$4 sm:$0xff]   ;;  %v4753_v45 = vld [vmem:[#allocation5 + $0x21c] ss:$24 sps:$4 sm:$0xff]   ;;  %v4756_v49 = vld [vmem:[#allocation5 + $0x218] ss:$24 sps:$4 sm:$0xff]  }
  0xb4   :  { %2673 = vmatprep.subr.bf16.mxu1 %v4711_v17  ;;  %v150_v46 = vld [vmem:[#allocation2 + $0x8] sm:$0xff]  ;;  %v4757_v50 = vld [vmem:[#allocation5 + $0x244] ss:$24 sps:$4 sm:$0xff]   ;;  %v4761_v52 = vld [vmem:[#allocation5 + $0x240] ss:$24 sps:$4 sm:$0xff]   ;;  %vm5705_vm0 = vmmov 0  }
  0xb5   :  { %v4755_v47 = vld [vmem:[#allocation5 + $0x210] ss:$24 sps:$4 sm:$0xff]   ;;  %v5871_v48 = vpack.c.bf16 %v150_v46, %v150_v46  ;;  %v4759_v51 = vld [vmem:[#allocation5 + $0x24c] ss:$24 sps:$4 sm:$0xff]   ;;  %v4765_v55 = vld [vmem:[#allocation5 + $0x27c] ss:$24 sps:$4 sm:$0xff]  }
  0xb6   :  { %2510 = vmatpush1.bf16.msra.mxu0 %v4713_v18  ;;  %v4762_v53 = vld [vmem:[#allocation5 + $0x248] ss:$24 sps:$4 sm:$0xff]   ;;  %v4763_v54 = vld [vmem:[#allocation5 + $0x274] ss:$24 sps:$4 sm:$0xff]   ;;  %v4768_v57 = vld [vmem:[#allocation5 + $0x278] ss:$24 sps:$4 sm:$0xff]  }
  0xb7   :  { %2674 = vmatpush1.bf16.msra.mxu1 %v4714_v19  ;;  %2511 = vmatprep.subr.bf16.mxu0 %v4715_v20  ;;  %v4767_v56 = vld [vmem:[#allocation5 + $0x270] ss:$24 sps:$4 sm:$0xff]   ;;  %v4769_v58 = vld [vmem:[#allocation5 + $0x2a4] ss:$24 sps:$4 sm:$0xff]   ;;  %v4773_v60 = vld [vmem:[#allocation5 + $0x2a0] ss:$24 sps:$4 sm:$0xff]  }
  0xb8   :  { %2675 = vmatprep.subr.bf16.mxu1 %v4717_v21  ;;  %2533 = vmatprep.mubr.bf16.mxu0 %v5871_v48  ;;  %v4771_v59 = vld [vmem:[#allocation5 + $0x2ac] ss:$24 sps:$4 sm:$0xff]   ;;  %v4774_v61 = vld [vmem:[#allocation5 + $0x2a8] ss:$24 sps:$4 sm:$0xff]   ;;  %v4777_v63 = vld [vmem:[#allocation5 + $0x2dc] ss:$24 sps:$4 sm:$0xff]  }
  0xb9   :  { %2697 = vmatprep.mubr.bf16.mxu1 %v5871_v48  ;;  %v4775_v62 = vld [vmem:[#allocation5 + $0x2d4] ss:$24 sps:$4 sm:$0xff]   ;;  %v4779_v0 = vld [vmem:[#allocation5 + $0x2d0] ss:$24 sps:$4 sm:$0xff]   ;;  %v149_v2 = vld [vmem:[#allocation2] sm:$0xff]  ;;  %s5706_s8 = smov [#allocation18]  }
  0xba   :  { %2512 = vmatpush1.bf16.msra.mxu0 %v4719_v22  ;;  %v4780_v1 = vld [vmem:[#allocation5 + $0x2d8] ss:$24 sps:$4 sm:$0xff]   ;;  %v4783_v3 = vld [vmem:[#allocation5 + $0x304] ss:$24 sps:$4 sm:$0xff]   ;;  %v5875_v5 = vpack.c.bf16 %v149_v2, %v149_v2  ;;  %v4784_v7 = vld [vmem:[#allocation5 + $0x308] ss:$24 sps:$4 sm:$0xff]  }
  0xbb   :  { %2676 = vmatpush1.bf16.msra.mxu1 %v4720_v23  ;;  %2513 = vmatprep.subr.bf16.mxu0 %v4721_v24  ;;  %v4786_v4 = vld [vmem:[#allocation5 + $0x30c] ss:$24 sps:$4 sm:$0xff]   ;;  %v4781_v6 = vld [vmem:[#allocation5 + $0x300] ss:$24 sps:$4 sm:$0xff]   ;;  %v4792_v9 = vld [vmem:[#allocation5 + $0x33c] ss:$24 sps:$4 sm:$0xff]  }
  0xbc   :  { %2677 = vmatprep.subr.bf16.mxu1 %v4723_v25  ;;  %v4789_v8 = vld [vmem:[#allocation5 + $0x334] ss:$24 sps:$4 sm:$0xff]   ;;  %v4787_v10 = vld [vmem:[#allocation5 + $0x330] ss:$24 sps:$4 sm:$0xff]   ;;  %v4795_v12 = vld [vmem:[#allocation5 + $0x364] ss:$24 sps:$4 sm:$0xff]  }
  0xbd   :  { %v4790_v11 = vld [vmem:[#allocation5 + $0x338] ss:$24 sps:$4 sm:$0xff]   ;;  %v4798_v13 = vld [vmem:[#allocation5 + $0x36c] ss:$24 sps:$4 sm:$0xff]   ;;  %v4796_v15 = vld [vmem:[#allocation5 + $0x368] ss:$24 sps:$4 sm:$0xff]  }
  0xbe   :  { %2514 = vmatpush1.bf16.msra.mxu0 %v4725_v26  ;;  %v4793_v14 = vld [vmem:[#allocation5 + $0x360] ss:$24 sps:$4 sm:$0xff]   ;;  %v4801_v16 = vld [vmem:[#allocation5 + $0x394] ss:$24 sps:$4 sm:$0xff]   ;;  %v4799_v18 = vld [vmem:[#allocation5 + $0x390] ss:$24 sps:$4 sm:$0xff]  }
  0xbf   :  { %2678 = vmatpush1.bf16.msra.mxu1 %v4726_v27  ;;  %2515 = vmatprep.subr.bf16.mxu0 %v4727_v28  ;;  %v4804_v17 = vld [vmem:[#allocation5 + $0x39c] ss:$24 sps:$4 sm:$0xff]   ;;  %v4802_v19 = vld [vmem:[#allocation5 + $0x398] ss:$24 sps:$4 sm:$0xff]   ;;  %v4810_v21 = vld [vmem:[#allocation5 + $0x3cc] ss:$24 sps:$4 sm:$0xff]  }
  0xc0   :  { %2679 = vmatprep.subr.bf16.mxu1 %v4729_v29  ;;  %v4807_v20 = vld [vmem:[#allocation5 + $0x3c4] ss:$24 sps:$4 sm:$0xff]   ;;  %v4805_v22 = vld [vmem:[#allocation5 + $0x3c0] ss:$24 sps:$4 sm:$0xff]   ;;  %v4813_v24 = vld [vmem:[#allocation5 + $0x3f4] ss:$24 sps:$4 sm:$0xff]  }
  0xc1   :  { %v4808_v23 = vld [vmem:[#allocation5 + $0x3c8] ss:$24 sps:$4 sm:$0xff]   ;;  %v4816_v25 = vld [vmem:[#allocation5 + $0x3fc] ss:$24 sps:$4 sm:$0xff]   ;;  %v4814_v27 = vld [vmem:[#allocation5 + $0x3f8] ss:$24 sps:$4 sm:$0xff]  }
  0xc2   :  { %2516 = vmatpush1.bf16.msra.mxu0 %v4731_v30  ;;  %v4811_v26 = vld [vmem:[#allocation5 + $0x3f0] ss:$24 sps:$4 sm:$0xff]   ;;  %v4819_v28 = vld [vmem:[#allocation5 + $0x424] ss:$24 sps:$4 sm:$0xff]   ;;  %s4040_s2 = sshll.u32 %s5706_s8, 4  ;;  %s4041_s2 = int_to_ptr.vmem [resolvable:$true] %s4040_s2 }
  0xc3   :  { %2680 = vmatpush1.bf16.msra.mxu1 %v4732_v31  ;;  %2517 = vmatprep.subr.bf16.mxu0 %v4733_v32  ;;  %v4822_v29 = vld [vmem:[#allocation5 + $0x42c] ss:$24 sps:$4 sm:$0xff]   ;;  %v152_v30 = vld [vmem:[#allocation2 + $0x18] sm:$0xff]  ;;  %v4868_v2 = vld [vmem:[#allocation5 + $0x5a8] ss:$24 sps:$4 sm:$0xff]   ;;  %s5631_s13 = scalar_lea.vmem %s4041_s2, 768  ;;  %p5636_p3 = scmp.lt.s32.totalorder %s4041_s2, %s4041_s2 }
  0xc4   :  { %2681 = vmatprep.subr.bf16.mxu1 %v4735_v33  ;;  %v4817_v31 = vld [vmem:[#allocation5 + $0x420] ss:$24 sps:$4 sm:$0xff]   ;;  %v5879_v32 = vpack.c.bf16 %v152_v30, %v152_v30  ;;  %v4843_v46 = vld [vmem:[#allocation5 + $0x4e4] ss:$24 sps:$4 sm:$0xff]   ;;  %p5632_p2 = scmp.ne.s32.totalorder %s4041_s2, %s5631_s13  ;;  %p5637_p4 = scmp.lt.s32.totalorder %s5631_s13, %s5631_s13 }
  0xc5   :  { %v4820_v33 = vld [vmem:[#allocation5 + $0x428] ss:$24 sps:$4 sm:$0xff]  }
  0xc6   :  { %2518 = vmatpush1.bf16.msra.mxu0 %v4737_v34  ;;  %v4825_v34 = vld [vmem:[#allocation5 + $0x454] ss:$24 sps:$4 sm:$0xff]   ;;  %v4901_v30 = vld [vmem:[#allocation5 + $0x6c0] ss:$24 sps:$4 sm:$0xff]   ;;  %p5638_p5 = por %p5637_p4, %p5636_p3 }
  0xc7   :  { %2682 = vmatpush1.bf16.msra.mxu1 %v4738_v35  ;;  %2519 = vmatprep.subr.bf16.mxu0 %v4739_v36  ;;  %v4828_v35 = vld [vmem:[#allocation5 + $0x45c] ss:$24 sps:$4 sm:$0xff]   ;;  %v4823_v36 = vld [vmem:[#allocation5 + $0x450] ss:$24 sps:$4 sm:$0xff]  }
  0xc8   :  { %2683 = vmatprep.subr.bf16.mxu1 %v4741_v37  ;;  %v4826_v37 = vld [vmem:[#allocation5 + $0x458] ss:$24 sps:$4 sm:$0xff]   ;;  %p5639_p6 = pnand %p5638_p5, %p5632_p2 }
  0xca   :  { %2520 = vmatpush1.bf16.msra.mxu0 %v4743_v38  ;;  %v4831_v38 = vld [vmem:[#allocation5 + $0x484] ss:$24 sps:$4 sm:$0xff]  }
  0xcb   :  { %2684 = vmatpush1.bf16.msra.mxu1 %v4744_v39  ;;  %2521 = vmatprep.subr.bf16.mxu0 %v4745_v40  ;;  %v4834_v39 = vld [vmem:[#allocation5 + $0x48c] ss:$24 sps:$4 sm:$0xff]   ;;  %v4829_v40 = vld [vmem:[#allocation5 + $0x480] ss:$24 sps:$4 sm:$0xff]  }
  0xcc   :  { %2685 = vmatprep.subr.bf16.mxu1 %v4747_v41  ;;  %v4832_v41 = vld [vmem:[#allocation5 + $0x488] ss:$24 sps:$4 sm:$0xff]  }
  0xce   :  { %2522 = vmatpush1.bf16.msra.mxu0 %v4749_v42  ;;  %v4837_v42 = vld [vmem:[#allocation5 + $0x4b4] ss:$24 sps:$4 sm:$0xff]  }
  0xcf   :  { %2686 = vmatpush1.bf16.msra.mxu1 %v4750_v43  ;;  %2523 = vmatprep.subr.bf16.mxu0 %v4751_v44  ;;  %v4840_v43 = vld [vmem:[#allocation5 + $0x4bc] ss:$24 sps:$4 sm:$0xff]   ;;  %v4835_v44 = vld [vmem:[#allocation5 + $0x4b0] ss:$24 sps:$4 sm:$0xff]  }
  0xd0   :  { %2687 = vmatprep.subr.bf16.mxu1 %v4753_v45  ;;  %v4838_v45 = vld [vmem:[#allocation5 + $0x4b8] ss:$24 sps:$4 sm:$0xff]  }
  0xd2   :  { %2524 = vmatpush1.bf16.msra.mxu0 %v4755_v47  ;;  %v4846_v47 = vld [vmem:[#allocation5 + $0x4ec] ss:$24 sps:$4 sm:$0xff]  }
  0xd3   :  { %2688 = vmatpush1.bf16.msra.mxu1 %v4756_v49  ;;  %2525 = vmatprep.subr.bf16.mxu0 %v4757_v50  ;;  %v4841_v49 = vld [vmem:[#allocation5 + $0x4e0] ss:$24 sps:$4 sm:$0xff]  }
  0xd4   :  { %2689 = vmatprep.subr.bf16.mxu1 %v4759_v51  ;;  %v4844_v50 = vld [vmem:[#allocation5 + $0x4e8] ss:$24 sps:$4 sm:$0xff]   ;;  %v4849_v51 = vld [vmem:[#allocation5 + $0x514] ss:$24 sps:$4 sm:$0xff]  }
  0xd6   :  { %2526 = vmatpush1.bf16.msra.mxu0 %v4761_v52  ;;  %v4852_v52 = vld [vmem:[#allocation5 + $0x51c] ss:$24 sps:$4 sm:$0xff]  }
  0xd7   :  { %2690 = vmatpush1.bf16.msra.mxu1 %v4762_v53  ;;  %2527 = vmatprep.subr.bf16.mxu0 %v4763_v54  ;;  %v4847_v53 = vld [vmem:[#allocation5 + $0x510] ss:$24 sps:$4 sm:$0xff]  }
  0xd8   :  { %2691 = vmatprep.subr.bf16.mxu1 %v4765_v55  ;;  %v4850_v54 = vld [vmem:[#allocation5 + $0x518] ss:$24 sps:$4 sm:$0xff]   ;;  %v4855_v55 = vld [vmem:[#allocation5 + $0x544] ss:$24 sps:$4 sm:$0xff]  }
  0xda   :  { %2528 = vmatpush1.bf16.msra.mxu0 %v4767_v56  ;;  %v4858_v56 = vld [vmem:[#allocation5 + $0x54c] ss:$24 sps:$4 sm:$0xff]  }
  0xdb   :  { %2692 = vmatpush1.bf16.msra.mxu1 %v4768_v57  ;;  %2529 = vmatprep.subr.bf16.mxu0 %v4769_v58  ;;  %v4853_v57 = vld [vmem:[#allocation5 + $0x540] ss:$24 sps:$4 sm:$0xff]  }
  0xdc   :  { %2693 = vmatprep.subr.bf16.mxu1 %v4771_v59  ;;  %v4856_v58 = vld [vmem:[#allocation5 + $0x548] ss:$24 sps:$4 sm:$0xff]   ;;  %v4861_v59 = vld [vmem:[#allocation5 + $0x574] ss:$24 sps:$4 sm:$0xff]  }
  0xde   :  { %2530 = vmatpush1.bf16.msra.mxu0 %v4773_v60  ;;  %v4864_v60 = vld [vmem:[#allocation5 + $0x57c] ss:$24 sps:$4 sm:$0xff]  }
  0xdf   :  { %2694 = vmatpush1.bf16.msra.mxu1 %v4774_v61  ;;  %2531 = vmatprep.subr.bf16.mxu0 %v4775_v62  ;;  %v4859_v61 = vld [vmem:[#allocation5 + $0x570] ss:$24 sps:$4 sm:$0xff]  }
  0xe0   :  { %2695 = vmatprep.subr.bf16.mxu1 %v4777_v63  ;;  %v4862_v62 = vld [vmem:[#allocation5 + $0x578] ss:$24 sps:$4 sm:$0xff]   ;;  %v4867_v63 = vld [vmem:[#allocation5 + $0x5a4] ss:$24 sps:$4 sm:$0xff]  }
  0xe2   :  { %2532 = vmatpush1.bf16.msra.mxu0 %v4779_v0  ;;  %v4870_v0 = vld [vmem:[#allocation5 + $0x5ac] ss:$24 sps:$4 sm:$0xff]  }
  0xe3   :  { %2696 = vmatpush1.bf16.msra.mxu1 %v4780_v1  ;;  %2542 = vmatprep.subr.bf16.mxu0 %v4783_v3  ;;  %v4865_v1 = vld [vmem:[#allocation5 + $0x5a0] ss:$24 sps:$4 sm:$0xff]   ;;  %v4873_v3 = vld [vmem:[#allocation5 + $0x5d4] ss:$24 sps:$4 sm:$0xff]  }
  0xe4   :  { %2706 = vmatprep.subr.bf16.mxu1 %v4786_v4  ;;  %v4876_v4 = vld [vmem:[#allocation5 + $0x5dc] ss:$24 sps:$4 sm:$0xff]  }
  0xe5   :  { %2534 = vmatmul.mubr.bf16.vlgmr.msra.gmra.mrb[0].mxu0 %v5875_v5 }
  0xe6   :  { %2698 = vmatmul.mubr.bf16.vlgmr.msra.gmra.mrb[0].mxu1 %v5875_v5  ;;  %2543 = vmatpush1.bf16.msra.mxu0 %v4781_v6  ;;  %v4871_v6 = vld [vmem:[#allocation5 + $0x5d0] ss:$24 sps:$4 sm:$0xff]  }
  0xe7   :  { %2707 = vmatpush1.bf16.msra.mxu1 %v4784_v7  ;;  %2544 = vmatprep.subr.bf16.mxu0 %v4789_v8  ;;  %v4874_v7 = vld [vmem:[#allocation5 + $0x5d8] ss:$24 sps:$4 sm:$0xff]   ;;  %v4879_v8 = vld [vmem:[#allocation5 + $0x604] ss:$24 sps:$4 sm:$0xff]  }
  0xe8   :  { %2708 = vmatprep.subr.bf16.mxu1 %v4792_v9  ;;  %2574 = vmatprep.mubr.bf16.mxu0 %v5879_v32  ;;  %v151_v9 = vld [vmem:[#allocation2 + $0x10] sm:$0xff] }
  0xe9   :  { %2738 = vmatprep.mubr.bf16.mxu1 %v5879_v32 }
  0xea   :  { %2545 = vmatpush1.bf16.msra.mxu0 %v4787_v10  ;;  %v4882_v10 = vld [vmem:[#allocation5 + $0x60c] ss:$24 sps:$4 sm:$0xff]  }
  0xeb   :  { %2709 = vmatpush1.bf16.msra.mxu1 %v4790_v11  ;;  %2546 = vmatprep.subr.bf16.mxu0 %v4795_v12  ;;  %v4877_v11 = vld [vmem:[#allocation5 + $0x600] ss:$24 sps:$4 sm:$0xff]  }
  0xec   :  { %2710 = vmatprep.subr.bf16.mxu1 %v4798_v13  ;;  %v4880_v12 = vld [vmem:[#allocation5 + $0x608] ss:$24 sps:$4 sm:$0xff]   ;;  %v5883_v13 = vpack.c.bf16 %v151_v9, %v151_v9 }
  0xed   :  { %v4961_v9 = vld [vmem:[#allocation5 + $0x8a0] ss:$24 sps:$4 sm:$0xff]  }
  0xee   :  { %2547 = vmatpush1.bf16.msra.mxu0 %v4793_v14  ;;  %v4885_v14 = vld [vmem:[#allocation5 + $0x634] ss:$24 sps:$4 sm:$0xff]  }
  0xef   :  { %2711 = vmatpush1.bf16.msra.mxu1 %v4796_v15  ;;  %2548 = vmatprep.subr.bf16.mxu0 %v4801_v16  ;;  %v4888_v15 = vld [vmem:[#allocation5 + $0x63c] ss:$24 sps:$4 sm:$0xff]   ;;  %v154_v16 = vld [vmem:[#allocation2 + $0x28] sm:$0xff] }
  0xf0   :  { %2712 = vmatprep.subr.bf16.mxu1 %v4804_v17  ;;  %v5885_v17 = vpack.c.bf16 %v154_v16, %v154_v16  ;;  %v4975_v16 = vld [vmem:[#allocation5 + $0x904] ss:$24 sps:$4 sm:$0xff]  }
  0xf2   :  { %2549 = vmatpush1.bf16.msra.mxu0 %v4799_v18  ;;  %v4883_v18 = vld [vmem:[#allocation5 + $0x630] ss:$24 sps:$4 sm:$0xff]  }
  0xf3   :  { %2713 = vmatpush1.bf16.msra.mxu1 %v4802_v19  ;;  %2550 = vmatprep.subr.bf16.mxu0 %v4807_v20  ;;  %v4886_v19 = vld [vmem:[#allocation5 + $0x638] ss:$24 sps:$4 sm:$0xff]   ;;  %v4891_v20 = vld [vmem:[#allocation5 + $0x664] ss:$24 sps:$4 sm:$0xff]  }
  0xf4   :  { %2714 = vmatprep.subr.bf16.mxu1 %v4810_v21  ;;  %v4894_v21 = vld [vmem:[#allocation5 + $0x66c] ss:$24 sps:$4 sm:$0xff]  }
  0xf6   :  { %2551 = vmatpush1.bf16.msra.mxu0 %v4805_v22  ;;  %v4889_v22 = vld [vmem:[#allocation5 + $0x660] ss:$24 sps:$4 sm:$0xff]  }
  0xf7   :  { %2715 = vmatpush1.bf16.msra.mxu1 %v4808_v23  ;;  %2552 = vmatprep.subr.bf16.mxu0 %v4813_v24  ;;  %v4892_v23 = vld [vmem:[#allocation5 + $0x668] ss:$24 sps:$4 sm:$0xff]   ;;  %v4897_v24 = vld [vmem:[#allocation5 + $0x694] ss:$24 sps:$4 sm:$0xff]  }
  0xf8   :  { %2716 = vmatprep.subr.bf16.mxu1 %v4816_v25  ;;  %v4900_v25 = vld [vmem:[#allocation5 + $0x69c] ss:$24 sps:$4 sm:$0xff]  }
  0xfa   :  { %2553 = vmatpush1.bf16.msra.mxu0 %v4811_v26  ;;  %v4895_v26 = vld [vmem:[#allocation5 + $0x690] ss:$24 sps:$4 sm:$0xff]  }
  0xfb   :  { %2717 = vmatpush1.bf16.msra.mxu1 %v4814_v27  ;;  %2554 = vmatprep.subr.bf16.mxu0 %v4819_v28  ;;  %v4898_v27 = vld [vmem:[#allocation5 + $0x698] ss:$24 sps:$4 sm:$0xff]   ;;  %v4903_v28 = vld [vmem:[#allocation5 + $0x6c4] ss:$24 sps:$4 sm:$0xff]  }
  0xfc   :  { %2718 = vmatprep.subr.bf16.mxu1 %v4822_v29  ;;  %v4906_v29 = vld [vmem:[#allocation5 + $0x6cc] ss:$24 sps:$4 sm:$0xff]  }
  0xfe   :  { %2555 = vmatpush1.bf16.msra.mxu0 %v4817_v31  ;;  %v4904_v31 = vld [vmem:[#allocation5 + $0x6c8] ss:$24 sps:$4 sm:$0xff]  }
  0xff   :  { %2719 = vmatpush1.bf16.msra.mxu1 %v4820_v33  ;;  %2556 = vmatprep.subr.bf16.mxu0 %v4825_v34  ;;  %v4909_v33 = vld [vmem:[#allocation5 + $0x6f4] ss:$24 sps:$4 sm:$0xff]  }
 0x100   :  { %2720 = vmatprep.subr.bf16.mxu1 %v4828_v35  ;;  %v4912_v34 = vld [vmem:[#allocation5 + $0x6fc] ss:$24 sps:$4 sm:$0xff]   ;;  %v4907_v35 = vld [vmem:[#allocation5 + $0x6f0] ss:$24 sps:$4 sm:$0xff]  }
 0x102   :  { %2557 = vmatpush1.bf16.msra.mxu0 %v4823_v36  ;;  %v4910_v36 = vld [vmem:[#allocation5 + $0x6f8] ss:$24 sps:$4 sm:$0xff]  }
 0x103   :  { %2721 = vmatpush1.bf16.msra.mxu1 %v4826_v37  ;;  %2558 = vmatprep.subr.bf16.mxu0 %v4831_v38  ;;  %v4915_v37 = vld [vmem:[#allocation5 + $0x724] ss:$24 sps:$4 sm:$0xff]  }
 0x104   :  { %2722 = vmatprep.subr.bf16.mxu1 %v4834_v39  ;;  %v4918_v38 = vld [vmem:[#allocation5 + $0x72c] ss:$24 sps:$4 sm:$0xff]   ;;  %v4913_v39 = vld [vmem:[#allocation5 + $0x720] ss:$24 sps:$4 sm:$0xff]  }
 0x106   :  { %2559 = vmatpush1.bf16.msra.mxu0 %v4829_v40  ;;  %v4916_v40 = vld [vmem:[#allocation5 + $0x728] ss:$24 sps:$4 sm:$0xff]  }
 0x107   :  { %2723 = vmatpush1.bf16.msra.mxu1 %v4832_v41  ;;  %2560 = vmatprep.subr.bf16.mxu0 %v4837_v42  ;;  %v4921_v41 = vld [vmem:[#allocation5 + $0x754] ss:$24 sps:$4 sm:$0xff]  }
 0x108   :  { %2724 = vmatprep.subr.bf16.mxu1 %v4840_v43  ;;  %v4924_v42 = vld [vmem:[#allocation5 + $0x75c] ss:$24 sps:$4 sm:$0xff]   ;;  %v4919_v43 = vld [vmem:[#allocation5 + $0x750] ss:$24 sps:$4 sm:$0xff]  }
 0x10a   :  { %2561 = vmatpush1.bf16.msra.mxu0 %v4835_v44  ;;  %v4922_v44 = vld [vmem:[#allocation5 + $0x758] ss:$24 sps:$4 sm:$0xff]  }
 0x10b   :  { %2725 = vmatpush1.bf16.msra.mxu1 %v4838_v45  ;;  %2562 = vmatprep.subr.bf16.mxu0 %v4843_v46  ;;  %v4927_v45 = vld [vmem:[#allocation5 + $0x784] ss:$24 sps:$4 sm:$0xff]  }
 0x10c   :  { %2726 = vmatprep.subr.bf16.mxu1 %v4846_v47  ;;  %v4930_v46 = vld [vmem:[#allocation5 + $0x78c] ss:$24 sps:$4 sm:$0xff]   ;;  %v4925_v47 = vld [vmem:[#allocation5 + $0x780] ss:$24 sps:$4 sm:$0xff]  }
 0x10e   :  { %2563 = vmatpush1.bf16.msra.mxu0 %v4841_v49  ;;  %v4928_v49 = vld [vmem:[#allocation5 + $0x788] ss:$24 sps:$4 sm:$0xff]  }
 0x10f   :  { %2727 = vmatpush1.bf16.msra.mxu1 %v4844_v50  ;;  %2564 = vmatprep.subr.bf16.mxu0 %v4849_v51  ;;  %v4933_v50 = vld [vmem:[#allocation5 + $0x7b4] ss:$24 sps:$4 sm:$0xff]  }
 0x110   :  { %2728 = vmatprep.subr.bf16.mxu1 %v4852_v52  ;;  %v4936_v51 = vld [vmem:[#allocation5 + $0x7bc] ss:$24 sps:$4 sm:$0xff]   ;;  %v4931_v52 = vld [vmem:[#allocation5 + $0x7b0] ss:$24 sps:$4 sm:$0xff]  }
 0x112   :  { %2565 = vmatpush1.bf16.msra.mxu0 %v4847_v53  ;;  %v4934_v53 = vld [vmem:[#allocation5 + $0x7b8] ss:$24 sps:$4 sm:$0xff]  }
 0x113   :  { %2729 = vmatpush1.bf16.msra.mxu1 %v4850_v54  ;;  %2566 = vmatprep.subr.bf16.mxu0 %v4855_v55  ;;  %v4939_v54 = vld [vmem:[#allocation5 + $0x7e4] ss:$24 sps:$4 sm:$0xff]  }
 0x114   :  { %2730 = vmatprep.subr.bf16.mxu1 %v4858_v56  ;;  %v4942_v55 = vld [vmem:[#allocation5 + $0x7ec] ss:$24 sps:$4 sm:$0xff]   ;;  %v4937_v56 = vld [vmem:[#allocation5 + $0x7e0] ss:$24 sps:$4 sm:$0xff]  }
 0x116   :  { %2567 = vmatpush1.bf16.msra.mxu0 %v4853_v57  ;;  %v4940_v57 = vld [vmem:[#allocation5 + $0x7e8] ss:$24 sps:$4 sm:$0xff]  }
 0x117   :  { %2731 = vmatpush1.bf16.msra.mxu1 %v4856_v58  ;;  %2568 = vmatprep.subr.bf16.mxu0 %v4861_v59  ;;  %v4945_v58 = vld [vmem:[#allocation5 + $0x814] ss:$24 sps:$4 sm:$0xff]  }
 0x118   :  { %2732 = vmatprep.subr.bf16.mxu1 %v4864_v60  ;;  %v4948_v59 = vld [vmem:[#allocation5 + $0x81c] ss:$24 sps:$4 sm:$0xff]   ;;  %v4943_v60 = vld [vmem:[#allocation5 + $0x810] ss:$24 sps:$4 sm:$0xff]  }
 0x11a   :  { %2569 = vmatpush1.bf16.msra.mxu0 %v4859_v61  ;;  %v4946_v61 = vld [vmem:[#allocation5 + $0x818] ss:$24 sps:$4 sm:$0xff]  }
 0x11b   :  { %2733 = vmatpush1.bf16.msra.mxu1 %v4862_v62  ;;  %2570 = vmatprep.subr.bf16.mxu0 %v4867_v63  ;;  %v4951_v62 = vld [vmem:[#allocation5 + $0x844] ss:$24 sps:$4 sm:$0xff]  }
 0x11c   :  { %2734 = vmatprep.subr.bf16.mxu1 %v4870_v0  ;;  %v4954_v63 = vld [vmem:[#allocation5 + $0x84c] ss:$24 sps:$4 sm:$0xff]   ;;  %v4949_v0 = vld [vmem:[#allocation5 + $0x840] ss:$24 sps:$4 sm:$0xff]  }
 0x11e   :  { %2571 = vmatpush1.bf16.msra.mxu0 %v4865_v1  ;;  %v4952_v1 = vld [vmem:[#allocation5 + $0x848] ss:$24 sps:$4 sm:$0xff]  }
 0x11f   :  { %2735 = vmatpush1.bf16.msra.mxu1 %v4868_v2  ;;  %2572 = vmatprep.subr.bf16.mxu0 %v4873_v3  ;;  %v4957_v2 = vld [vmem:[#allocation5 + $0x874] ss:$24 sps:$4 sm:$0xff]  }
 0x120   :  { %2736 = vmatprep.subr.bf16.mxu1 %v4876_v4  ;;  %v4960_v3 = vld [vmem:[#allocation5 + $0x87c] ss:$24 sps:$4 sm:$0xff]   ;;  %v4955_v4 = vld [vmem:[#allocation5 + $0x870] ss:$24 sps:$4 sm:$0xff]  }
 0x122   :  { %2573 = vmatpush1.bf16.msra.mxu0 %v4871_v6  ;;  %v4958_v6 = vld [vmem:[#allocation5 + $0x878] ss:$24 sps:$4 sm:$0xff]  }
 0x123   :  { %2737 = vmatpush1.bf16.msra.mxu1 %v4874_v7  ;;  %2583 = vmatprep.subr.bf16.mxu0 %v4879_v8  ;;  %v4963_v7 = vld [vmem:[#allocation5 + $0x8a4] ss:$24 sps:$4 sm:$0xff]  }
 0x124   :  { %2747 = vmatprep.subr.bf16.mxu1 %v4882_v10  ;;  %v4966_v8 = vld [vmem:[#allocation5 + $0x8ac] ss:$24 sps:$4 sm:$0xff]   ;;  %v4964_v10 = vld [vmem:[#allocation5 + $0x8a8] ss:$24 sps:$4 sm:$0xff]  }
 0x125   :  { %2575 = vmatmul.mubr.bf16.vlgmr.msra.gmra.mrb[0].mxu0 %v5883_v13 }
 0x126   :  { %2739 = vmatmul.mubr.bf16.vlgmr.msra.gmra.mrb[0].mxu1 %v5883_v13  ;;  %2584 = vmatpush1.bf16.msra.mxu0 %v4877_v11  ;;  %v4969_v11 = vld [vmem:[#allocation5 + $0x8d4] ss:$24 sps:$4 sm:$0xff]  }
 0x127   :  { %2748 = vmatpush1.bf16.msra.mxu1 %v4880_v12  ;;  %2585 = vmatprep.subr.bf16.mxu0 %v4885_v14  ;;  %v4972_v12 = vld [vmem:[#allocation5 + $0x8dc] ss:$24 sps:$4 sm:$0xff]   ;;  %v4967_v14 = vld [vmem:[#allocation5 + $0x8d0] ss:$24 sps:$4 sm:$0xff]  }
 0x128   :  { %2749 = vmatprep.subr.bf16.mxu1 %v4888_v15  ;;  %2615 = vmatprep.mubr.bf16.mxu0 %v5885_v17  ;;  %v4970_v15 = vld [vmem:[#allocation5 + $0x8d8] ss:$24 sps:$4 sm:$0xff]  }
 0x129   :  { %2779 = vmatprep.mubr.bf16.mxu1 %v5885_v17 }
 0x12a   :  { %2586 = vmatpush1.bf16.msra.mxu0 %v4883_v18  ;;  %v153_v18 = vld [vmem:[#allocation2 + $0x20] sm:$0xff] }
 0x12b   :  { %2750 = vmatpush1.bf16.msra.mxu1 %v4886_v19  ;;  %2587 = vmatprep.subr.bf16.mxu0 %v4891_v20  ;;  %v4978_v19 = vld [vmem:[#allocation5 + $0x90c] ss:$24 sps:$4 sm:$0xff]   ;;  %v4973_v20 = vld [vmem:[#allocation5 + $0x900] ss:$24 sps:$4 sm:$0xff]  }
 0x12c   :  { %2751 = vmatprep.subr.bf16.mxu1 %v4894_v21  ;;  %v4976_v21 = vld [vmem:[#allocation5 + $0x908] ss:$24 sps:$4 sm:$0xff]  }
 0x12e   :  { %2588 = vmatpush1.bf16.msra.mxu0 %v4889_v22  ;;  %v5891_v22 = vpack.c.bf16 %v153_v18, %v153_v18  ;;  %v5059_v18 = vld [vmem:[#allocation5 + $0xba4] ss:$24 sps:$4 sm:$0xff]  }
 0x12f   :  { %2752 = vmatpush1.bf16.msra.mxu1 %v4892_v23  ;;  %2589 = vmatprep.subr.bf16.mxu0 %v4897_v24  ;;  %v156_v23 = vld [vmem:[#allocation2 + $0x38] sm:$0xff]  ;;  %v4981_v24 = vld [vmem:[#allocation5 + $0x934] ss:$24 sps:$4 sm:$0xff]  }
 0x130   :  { %2753 = vmatprep.subr.bf16.mxu1 %v4900_v25  ;;  %v4984_v25 = vld [vmem:[#allocation5 + $0x93c] ss:$24 sps:$4 sm:$0xff]  }
 0x132   :  { %2590 = vmatpush1.bf16.msra.mxu0 %v4895_v26  ;;  %v5893_v26 = vpack.c.bf16 %v156_v23, %v156_v23  ;;  %v5065_v23 = vld [vmem:[#allocation5 + $0xbd4] ss:$24 sps:$4 sm:$0xff]  }
 0x133   :  { %2754 = vmatpush1.bf16.msra.mxu1 %v4898_v27  ;;  %2591 = vmatprep.subr.bf16.mxu0 %v4903_v28  ;;  %v4979_v27 = vld [vmem:[#allocation5 + $0x930] ss:$24 sps:$4 sm:$0xff]  }
 0x134   :  { %2755 = vmatprep.subr.bf16.mxu1 %v4906_v29  ;;  %v4982_v28 = vld [vmem:[#allocation5 + $0x938] ss:$24 sps:$4 sm:$0xff]   ;;  %v4987_v29 = vld [vmem:[#allocation5 + $0x964] ss:$24 sps:$4 sm:$0xff]  }
 0x136   :  { %2592 = vmatpush1.bf16.msra.mxu0 %v4901_v30  ;;  %v4990_v30 = vld [vmem:[#allocation5 + $0x96c] ss:$24 sps:$4 sm:$0xff]  }
 0x137   :  { %2756 = vmatpush1.bf16.msra.mxu1 %v4904_v31  ;;  %2593 = vmatprep.subr.bf16.mxu0 %v4909_v33  ;;  %v4985_v31 = vld [vmem:[#allocation5 + $0x960] ss:$24 sps:$4 sm:$0xff]  }
 0x138   :  { %2757 = vmatprep.subr.bf16.mxu1 %v4912_v34  ;;  %v4988_v33 = vld [vmem:[#allocation5 + $0x968] ss:$24 sps:$4 sm:$0xff]   ;;  %v4993_v34 = vld [vmem:[#allocation5 + $0x994] ss:$24 sps:$4 sm:$0xff]  }
 0x13a   :  { %2594 = vmatpush1.bf16.msra.mxu0 %v4907_v35  ;;  %v4996_v35 = vld [vmem:[#allocation5 + $0x99c] ss:$24 sps:$4 sm:$0xff]  }
 0x13b   :  { %2758 = vmatpush1.bf16.msra.mxu1 %v4910_v36  ;;  %2595 = vmatprep.subr.bf16.mxu0 %v4915_v37  ;;  %v4991_v36 = vld [vmem:[#allocation5 + $0x990] ss:$24 sps:$4 sm:$0xff]  }
 0x13c   :  { %2759 = vmatprep.subr.bf16.mxu1 %v4918_v38  ;;  %v4994_v37 = vld [vmem:[#allocation5 + $0x998] ss:$24 sps:$4 sm:$0xff]   ;;  %v4999_v38 = vld [vmem:[#allocation5 + $0x9c4] ss:$24 sps:$4 sm:$0xff]  }
 0x13e   :  { %2596 = vmatpush1.bf16.msra.mxu0 %v4913_v39  ;;  %v5002_v39 = vld [vmem:[#allocation5 + $0x9cc] ss:$24 sps:$4 sm:$0xff]  }
 0x13f   :  { %2760 = vmatpush1.bf16.msra.mxu1 %v4916_v40  ;;  %2597 = vmatprep.subr.bf16.mxu0 %v4921_v41  ;;  %v4997_v40 = vld [vmem:[#allocation5 + $0x9c0] ss:$24 sps:$4 sm:$0xff]  }
 0x140   :  { %2761 = vmatprep.subr.bf16.mxu1 %v4924_v42  ;;  %v5000_v41 = vld [vmem:[#allocation5 + $0x9c8] ss:$24 sps:$4 sm:$0xff]   ;;  %v5005_v42 = vld [vmem:[#allocation5 + $0x9f4] ss:$24 sps:$4 sm:$0xff]  }
 0x142   :  { %2598 = vmatpush1.bf16.msra.mxu0 %v4919_v43  ;;  %v5008_v43 = vld [vmem:[#allocation5 + $0x9fc] ss:$24 sps:$4 sm:$0xff]  }
 0x143   :  { %2762 = vmatpush1.bf16.msra.mxu1 %v4922_v44  ;;  %2599 = vmatprep.subr.bf16.mxu0 %v4927_v45  ;;  %v5003_v44 = vld [vmem:[#allocation5 + $0x9f0] ss:$24 sps:$4 sm:$0xff]  }
 0x144   :  { %2763 = vmatprep.subr.bf16.mxu1 %v4930_v46  ;;  %v5006_v45 = vld [vmem:[#allocation5 + $0x9f8] ss:$24 sps:$4 sm:$0xff]   ;;  %v5011_v46 = vld [vmem:[#allocation5 + $0xa24] ss:$24 sps:$4 sm:$0xff]  }
 0x146   :  { %2600 = vmatpush1.bf16.msra.mxu0 %v4925_v47  ;;  %v5014_v47 = vld [vmem:[#allocation5 + $0xa2c] ss:$24 sps:$4 sm:$0xff]  }
 0x147   :  { %2764 = vmatpush1.bf16.msra.mxu1 %v4928_v49  ;;  %2601 = vmatprep.subr.bf16.mxu0 %v4933_v50  ;;  %v5009_v49 = vld [vmem:[#allocation5 + $0xa20] ss:$24 sps:$4 sm:$0xff]  }
 0x148   :  { %2765 = vmatprep.subr.bf16.mxu1 %v4936_v51  ;;  %v5012_v50 = vld [vmem:[#allocation5 + $0xa28] ss:$24 sps:$4 sm:$0xff]   ;;  %v5017_v51 = vld [vmem:[#allocation5 + $0xa54] ss:$24 sps:$4 sm:$0xff]  }
 0x14a   :  { %2602 = vmatpush1.bf16.msra.mxu0 %v4931_v52  ;;  %v5020_v52 = vld [vmem:[#allocation5 + $0xa5c] ss:$24 sps:$4 sm:$0xff]  }
 0x14b   :  { %2766 = vmatpush1.bf16.msra.mxu1 %v4934_v53  ;;  %2603 = vmatprep.subr.bf16.mxu0 %v4939_v54  ;;  %v5015_v53 = vld [vmem:[#allocation5 + $0xa50] ss:$24 sps:$4 sm:$0xff]  }
 0x14c   :  { %2767 = vmatprep.subr.bf16.mxu1 %v4942_v55  ;;  %v5018_v54 = vld [vmem:[#allocation5 + $0xa58] ss:$24 sps:$4 sm:$0xff]   ;;  %v5023_v55 = vld [vmem:[#allocation5 + $0xa84] ss:$24 sps:$4 sm:$0xff]  }
 0x14e   :  { %2604 = vmatpush1.bf16.msra.mxu0 %v4937_v56  ;;  %v5026_v56 = vld [vmem:[#allocation5 + $0xa8c] ss:$24 sps:$4 sm:$0xff]  }
 0x14f   :  { %2768 = vmatpush1.bf16.msra.mxu1 %v4940_v57  ;;  %2605 = vmatprep.subr.bf16.mxu0 %v4945_v58  ;;  %v5021_v57 = vld [vmem:[#allocation5 + $0xa80] ss:$24 sps:$4 sm:$0xff]  }
 0x150   :  { %2769 = vmatprep.subr.bf16.mxu1 %v4948_v59  ;;  %v5024_v58 = vld [vmem:[#allocation5 + $0xa88] ss:$24 sps:$4 sm:$0xff]   ;;  %v5029_v59 = vld [vmem:[#allocation5 + $0xab4] ss:$24 sps:$4 sm:$0xff]  }
 0x152   :  { %2606 = vmatpush1.bf16.msra.mxu0 %v4943_v60  ;;  %v5032_v60 = vld [vmem:[#allocation5 + $0xabc] ss:$24 sps:$4 sm:$0xff]  }
 0x153   :  { %2770 = vmatpush1.bf16.msra.mxu1 %v4946_v61  ;;  %2607 = vmatprep.subr.bf16.mxu0 %v4951_v62  ;;  %v5027_v61 = vld [vmem:[#allocation5 + $0xab0] ss:$24 sps:$4 sm:$0xff]  }
 0x154   :  { %2771 = vmatprep.subr.bf16.mxu1 %v4954_v63  ;;  %v5030_v62 = vld [vmem:[#allocation5 + $0xab8] ss:$24 sps:$4 sm:$0xff]   ;;  %v5035_v63 = vld [vmem:[#allocation5 + $0xae4] ss:$24 sps:$4 sm:$0xff]  }
 0x156   :  { %2608 = vmatpush1.bf16.msra.mxu0 %v4949_v0  ;;  %v5038_v0 = vld [vmem:[#allocation5 + $0xaec] ss:$24 sps:$4 sm:$0xff]  }
 0x157   :  { %2772 = vmatpush1.bf16.msra.mxu1 %v4952_v1  ;;  %2609 = vmatprep.subr.bf16.mxu0 %v4957_v2  ;;  %v5033_v1 = vld [vmem:[#allocation5 + $0xae0] ss:$24 sps:$4 sm:$0xff]  }
 0x158   :  { %2773 = vmatprep.subr.bf16.mxu1 %v4960_v3  ;;  %v5036_v2 = vld [vmem:[#allocation5 + $0xae8] ss:$24 sps:$4 sm:$0xff]   ;;  %v5041_v3 = vld [vmem:[#allocation5 + $0xb14] ss:$24 sps:$4 sm:$0xff]  }
 0x15a   :  { %2610 = vmatpush1.bf16.msra.mxu0 %v4955_v4  ;;  %v5044_v4 = vld [vmem:[#allocation5 + $0xb1c] ss:$24 sps:$4 sm:$0xff]  }
 0x15b   :  { %2774 = vmatpush1.bf16.msra.mxu1 %v4958_v6  ;;  %2611 = vmatprep.subr.bf16.mxu0 %v4963_v7  ;;  %v5039_v6 = vld [vmem:[#allocation5 + $0xb10] ss:$24 sps:$4 sm:$0xff]  }
 0x15c   :  { %2775 = vmatprep.subr.bf16.mxu1 %v4966_v8  ;;  %v5042_v7 = vld [vmem:[#allocation5 + $0xb18] ss:$24 sps:$4 sm:$0xff]   ;;  %v5047_v8 = vld [vmem:[#allocation5 + $0xb44] ss:$24 sps:$4 sm:$0xff]  }
 0x15e   :  { %2612 = vmatpush1.bf16.msra.mxu0 %v4961_v9  ;;  %v5050_v9 = vld [vmem:[#allocation5 + $0xb4c] ss:$24 sps:$4 sm:$0xff]  }
 0x15f   :  { %2776 = vmatpush1.bf16.msra.mxu1 %v4964_v10  ;;  %2613 = vmatprep.subr.bf16.mxu0 %v4969_v11  ;;  %v5045_v10 = vld [vmem:[#allocation5 + $0xb40] ss:$24 sps:$4 sm:$0xff]  }
 0x160   :  { %2777 = vmatprep.subr.bf16.mxu1 %v4972_v12  ;;  %v5048_v11 = vld [vmem:[#allocation5 + $0xb48] ss:$24 sps:$4 sm:$0xff]   ;;  %v5053_v12 = vld [vmem:[#allocation5 + $0xb74] ss:$24 sps:$4 sm:$0xff]  }
 0x162   :  { %2614 = vmatpush1.bf16.msra.mxu0 %v4967_v14  ;;  %v5056_v14 = vld [vmem:[#allocation5 + $0xb7c] ss:$24 sps:$4 sm:$0xff]  }
 0x163   :  { %2778 = vmatpush1.bf16.msra.mxu1 %v4970_v15  ;;  %2624 = vmatprep.subr.bf16.mxu0 %v4975_v16  ;;  %v5051_v15 = vld [vmem:[#allocation5 + $0xb70] ss:$24 sps:$4 sm:$0xff]  }
 0x164   :  { %2788 = vmatprep.subr.bf16.mxu1 %v4978_v19  ;;  %v5054_v16 = vld [vmem:[#allocation5 + $0xb78] ss:$24 sps:$4 sm:$0xff]   ;;  %v5062_v19 = vld [vmem:[#allocation5 + $0xbac] ss:$24 sps:$4 sm:$0xff]  }
 0x165   :  { %2616 = vmatmul.mubr.bf16.vlgmr.msra.gmra.mrb[0].mxu0 %v5891_v22 }
 0x166   :  { %2780 = vmatmul.mubr.bf16.vlgmr.msra.gmra.mrb[0].mxu1 %v5891_v22  ;;  %2625 = vmatpush1.bf16.msra.mxu0 %v4973_v20  ;;  %v5057_v20 = vld [vmem:[#allocation5 + $0xba0] ss:$24 sps:$4 sm:$0xff]  }
 0x167   :  { %2789 = vmatpush1.bf16.msra.mxu1 %v4976_v21  ;;  %2626 = vmatprep.subr.bf16.mxu0 %v4981_v24  ;;  %v5060_v21 = vld [vmem:[#allocation5 + $0xba8] ss:$24 sps:$4 sm:$0xff]   ;;  %v5068_v24 = vld [vmem:[#allocation5 + $0xbdc] ss:$24 sps:$4 sm:$0xff]  }
 0x168   :  { %2790 = vmatprep.subr.bf16.mxu1 %v4984_v25  ;;  %2656 = vmatprep.mubr.bf16.mxu0 %v5893_v26  ;;  %v5063_v25 = vld [vmem:[#allocation5 + $0xbd0] ss:$24 sps:$4 sm:$0xff]  }
 0x169   :  { %2820 = vmatprep.mubr.bf16.mxu1 %v5893_v26 }
 0x16a   :  { %2627 = vmatpush1.bf16.msra.mxu0 %v4979_v27  ;;  %v5066_v27 = vld [vmem:[#allocation5 + $0xbd8] ss:$24 sps:$4 sm:$0xff]  }
 0x16b   :  { %2791 = vmatpush1.bf16.msra.mxu1 %v4982_v28  ;;  %2628 = vmatprep.subr.bf16.mxu0 %v4987_v29  ;;  %v155_v28 = vld [vmem:[#allocation2 + $0x30] sm:$0xff] }
 0x16c   :  { %2792 = vmatprep.subr.bf16.mxu1 %v4990_v30  ;;  %v5071_v29 = vld [vmem:[#allocation5 + $0x14] ss:$24 sps:$4 sm:$0xff]   ;;  %v5899_v30 = vpack.c.bf16 %v155_v28, %v155_v28 }
 0x16d   :  { %v5246_v28 = vld [vmem:[#allocation8 + $0xa0] ss:$8 sps:$4 sm:$0xff]  }
 0x16e   :  { %2629 = vmatpush1.bf16.msra.mxu0 %v4985_v31  ;;  %v5069_v31 = vld [vmem:[#allocation5 + $0x10] ss:$24 sps:$4 sm:$0xff]  }
 0x16f   :  { %2793 = vmatpush1.bf16.msra.mxu1 %v4988_v33  ;;  %2630 = vmatprep.subr.bf16.mxu0 %v4993_v34  ;;  %v5074_v33 = vld [vmem:[#allocation5 + $0x44] ss:$24 sps:$4 sm:$0xff]   ;;  %v5072_v34 = vld [vmem:[#allocation5 + $0x40] ss:$24 sps:$4 sm:$0xff]  }
 0x170   :  { %2794 = vmatprep.subr.bf16.mxu1 %v4996_v35  ;;  %v5077_v35 = vld [vmem:[#allocation5 + $0x74] ss:$24 sps:$4 sm:$0xff]  }
 0x172   :  { %2631 = vmatpush1.bf16.msra.mxu0 %v4991_v36  ;;  %v5075_v36 = vld [vmem:[#allocation5 + $0x70] ss:$24 sps:$4 sm:$0xff]  }
 0x173   :  { %2795 = vmatpush1.bf16.msra.mxu1 %v4994_v37  ;;  %2632 = vmatprep.subr.bf16.mxu0 %v4999_v38  ;;  %v5080_v37 = vld [vmem:[#allocation5 + $0xa4] ss:$24 sps:$4 sm:$0xff]   ;;  %v5078_v38 = vld [vmem:[#allocation5 + $0xa0] ss:$24 sps:$4 sm:$0xff]  }
 0x174   :  { %2796 = vmatprep.subr.bf16.mxu1 %v5002_v39  ;;  %v5083_v39 = vld [vmem:[#allocation5 + $0xd4] ss:$24 sps:$4 sm:$0xff]  }
 0x176   :  { %2633 = vmatpush1.bf16.msra.mxu0 %v4997_v40  ;;  %v5081_v40 = vld [vmem:[#allocation5 + $0xd0] ss:$24 sps:$4 sm:$0xff]  }
 0x177   :  { %2797 = vmatpush1.bf16.msra.mxu1 %v5000_v41  ;;  %2634 = vmatprep.subr.bf16.mxu0 %v5005_v42  ;;  %v5086_v41 = vld [vmem:[#allocation5 + $0x104] ss:$24 sps:$4 sm:$0xff]   ;;  %v5084_v42 = vld [vmem:[#allocation5 + $0x100] ss:$24 sps:$4 sm:$0xff]  }
 0x178   :  { %2798 = vmatprep.subr.bf16.mxu1 %v5008_v43  ;;  %v5089_v43 = vld [vmem:[#allocation5 + $0x134] ss:$24 sps:$4 sm:$0xff]  }
 0x17a   :  { %2635 = vmatpush1.bf16.msra.mxu0 %v5003_v44  ;;  %v5087_v44 = vld [vmem:[#allocation5 + $0x130] ss:$24 sps:$4 sm:$0xff]  }
 0x17b   :  { %2799 = vmatpush1.bf16.msra.mxu1 %v5006_v45  ;;  %2636 = vmatprep.subr.bf16.mxu0 %v5011_v46  ;;  %v5090_v45 = vld [vmem:[#allocation5 + $0x160] ss:$24 sps:$4 sm:$0xff]   ;;  %v5186_v46 = vld [vmem:[#allocation8] ss:$8 sps:$4 sm:$0xff]  }
 0x17c   :  { %2800 = vmatprep.subr.bf16.mxu1 %v5014_v47  ;;  %v5188_v47 = vld [vmem:[#allocation8 + $0x4] ss:$8 sps:$4 sm:$0xff]  }
 0x17e   :  { %2637 = vmatpush1.bf16.msra.mxu0 %v5009_v49  ;;  %v5095_v49 = vld [vmem:[#allocation5 + $0x194] ss:$24 sps:$4 sm:$0xff]  }
 0x17f   :  { %2801 = vmatpush1.bf16.msra.mxu1 %v5012_v50  ;;  %2638 = vmatprep.subr.bf16.mxu0 %v5017_v51  ;;  %v5093_v50 = vld [vmem:[#allocation5 + $0x190] ss:$24 sps:$4 sm:$0xff]   ;;  %v5192_v51 = vld [vmem:[#allocation8 + $0x10] ss:$8 sps:$4 sm:$0xff]  }
 0x180   :  { %2802 = vmatprep.subr.bf16.mxu1 %v5020_v52  ;;  %v5194_v52 = vld [vmem:[#allocation8 + $0x14] ss:$8 sps:$4 sm:$0xff]  }
 0x182   :  { %2639 = vmatpush1.bf16.msra.mxu0 %v5015_v53  ;;  %v5098_v53 = vld [vmem:[#allocation5 + $0x1c4] ss:$24 sps:$4 sm:$0xff]  }
 0x183   :  { %2803 = vmatpush1.bf16.msra.mxu1 %v5018_v54  ;;  %2640 = vmatprep.subr.bf16.mxu0 %v5023_v55  ;;  %v5096_v54 = vld [vmem:[#allocation5 + $0x1c0] ss:$24 sps:$4 sm:$0xff]   ;;  %v5198_v55 = vld [vmem:[#allocation8 + $0x20] ss:$8 sps:$4 sm:$0xff]  }
 0x184   :  { %2804 = vmatprep.subr.bf16.mxu1 %v5026_v56  ;;  %v5200_v56 = vld [vmem:[#allocation8 + $0x24] ss:$8 sps:$4 sm:$0xff]  }
 0x186   :  { %2641 = vmatpush1.bf16.msra.mxu0 %v5021_v57  ;;  %v5101_v57 = vld [vmem:[#allocation5 + $0x1f4] ss:$24 sps:$4 sm:$0xff]  }
 0x187   :  { %2805 = vmatpush1.bf16.msra.mxu1 %v5024_v58  ;;  %2642 = vmatprep.subr.bf16.mxu0 %v5029_v59  ;;  %v5099_v58 = vld [vmem:[#allocation5 + $0x1f0] ss:$24 sps:$4 sm:$0xff]   ;;  %v5204_v59 = vld [vmem:[#allocation8 + $0x30] ss:$8 sps:$4 sm:$0xff]  }
 0x188   :  { %2806 = vmatprep.subr.bf16.mxu1 %v5032_v60  ;;  %v5206_v60 = vld [vmem:[#allocation8 + $0x34] ss:$8 sps:$4 sm:$0xff]  }
 0x18a   :  { %2643 = vmatpush1.bf16.msra.mxu0 %v5027_v61  ;;  %v5104_v61 = vld [vmem:[#allocation5 + $0x224] ss:$24 sps:$4 sm:$0xff]  }
 0x18b   :  { %2807 = vmatpush1.bf16.msra.mxu1 %v5030_v62  ;;  %2644 = vmatprep.subr.bf16.mxu0 %v5035_v63  ;;  %v5102_v62 = vld [vmem:[#allocation5 + $0x220] ss:$24 sps:$4 sm:$0xff]   ;;  %v5210_v63 = vld [vmem:[#allocation8 + $0x40] ss:$8 sps:$4 sm:$0xff]  }
 0x18c   :  { %2808 = vmatprep.subr.bf16.mxu1 %v5038_v0  ;;  %v5212_v0 = vld [vmem:[#allocation8 + $0x44] ss:$8 sps:$4 sm:$0xff]  }
 0x18e   :  { %2645 = vmatpush1.bf16.msra.mxu0 %v5033_v1  ;;  %v5107_v1 = vld [vmem:[#allocation5 + $0x254] ss:$24 sps:$4 sm:$0xff]  }
 0x18f   :  { %2809 = vmatpush1.bf16.msra.mxu1 %v5036_v2  ;;  %2646 = vmatprep.subr.bf16.mxu0 %v5041_v3  ;;  %v5105_v2 = vld [vmem:[#allocation5 + $0x250] ss:$24 sps:$4 sm:$0xff]   ;;  %v5216_v3 = vld [vmem:[#allocation8 + $0x50] ss:$8 sps:$4 sm:$0xff]  }
 0x190   :  { %2810 = vmatprep.subr.bf16.mxu1 %v5044_v4  ;;  %v5218_v4 = vld [vmem:[#allocation8 + $0x54] ss:$8 sps:$4 sm:$0xff]  }
 0x192   :  { %2647 = vmatpush1.bf16.msra.mxu0 %v5039_v6  ;;  %v5110_v6 = vld [vmem:[#allocation5 + $0x284] ss:$24 sps:$4 sm:$0xff]  }
 0x193   :  { %2811 = vmatpush1.bf16.msra.mxu1 %v5042_v7  ;;  %2648 = vmatprep.subr.bf16.mxu0 %v5047_v8  ;;  %v5108_v7 = vld [vmem:[#allocation5 + $0x280] ss:$24 sps:$4 sm:$0xff]   ;;  %v5222_v8 = vld [vmem:[#allocation8 + $0x60] ss:$8 sps:$4 sm:$0xff]  }
 0x194   :  { %2812 = vmatprep.subr.bf16.mxu1 %v5050_v9  ;;  %v5224_v9 = vld [vmem:[#allocation8 + $0x64] ss:$8 sps:$4 sm:$0xff]  }
 0x196   :  { %2649 = vmatpush1.bf16.msra.mxu0 %v5045_v10  ;;  %v5113_v10 = vld [vmem:[#allocation5 + $0x2b4] ss:$24 sps:$4 sm:$0xff]  }
 0x197   :  { %2813 = vmatpush1.bf16.msra.mxu1 %v5048_v11  ;;  %2650 = vmatprep.subr.bf16.mxu0 %v5053_v12  ;;  %v5111_v11 = vld [vmem:[#allocation5 + $0x2b0] ss:$24 sps:$4 sm:$0xff]   ;;  %v5228_v12 = vld [vmem:[#allocation8 + $0x70] ss:$8 sps:$4 sm:$0xff]  }
 0x198   :  { %2814 = vmatprep.subr.bf16.mxu1 %v5056_v14  ;;  %v5230_v14 = vld [vmem:[#allocation8 + $0x74] ss:$8 sps:$4 sm:$0xff]  }
 0x19a   :  { %2651 = vmatpush1.bf16.msra.mxu0 %v5051_v15  ;;  %v5116_v15 = vld [vmem:[#allocation5 + $0x2e4] ss:$24 sps:$4 sm:$0xff]  }
 0x19b   :  { %2815 = vmatpush1.bf16.msra.mxu1 %v5054_v16  ;;  %2652 = vmatprep.subr.bf16.mxu0 %v5059_v18  ;;  %v5114_v16 = vld [vmem:[#allocation5 + $0x2e0] ss:$24 sps:$4 sm:$0xff]   ;;  %v5234_v18 = vld [vmem:[#allocation8 + $0x80] ss:$8 sps:$4 sm:$0xff]  }
 0x19c   :  { %2816 = vmatprep.subr.bf16.mxu1 %v5062_v19  ;;  %v5236_v19 = vld [vmem:[#allocation8 + $0x84] ss:$8 sps:$4 sm:$0xff]  }
 0x19e   :  { %2653 = vmatpush1.bf16.msra.mxu0 %v5057_v20  ;;  %v5119_v20 = vld [vmem:[#allocation5 + $0x314] ss:$24 sps:$4 sm:$0xff]  }
 0x19f   :  { %2817 = vmatpush1.bf16.msra.mxu1 %v5060_v21  ;;  %2654 = vmatprep.subr.bf16.mxu0 %v5065_v23  ;;  %v5117_v21 = vld [vmem:[#allocation5 + $0x310] ss:$24 sps:$4 sm:$0xff]   ;;  %v5240_v23 = vld [vmem:[#allocation8 + $0x90] ss:$8 sps:$4 sm:$0xff]  }
 0x1a0   :  { %2818 = vmatprep.subr.bf16.mxu1 %v5068_v24  ;;  %v5242_v24 = vld [vmem:[#allocation8 + $0x94] ss:$8 sps:$4 sm:$0xff]  }
 0x1a2   :  { %2655 = vmatpush1.bf16.msra.mxu0 %v5063_v25  ;;  %v5122_v25 = vld [vmem:[#allocation5 + $0x344] ss:$24 sps:$4 sm:$0xff]  }
 0x1a3   :  { %2819 = vmatpush1.bf16.msra.mxu1 %v5066_v27  ;;  %2829 = vmatprep.subr.bf16.mxu0 %v5071_v29  ;;  %v5120_v27 = vld [vmem:[#allocation5 + $0x340] ss:$24 sps:$4 sm:$0xff]   ;;  %v5248_v29 = vld [vmem:[#allocation8 + $0xa4] ss:$8 sps:$4 sm:$0xff]  }
 0x1a4   :  { %3599 = vmatprep.subr.bf16.mxu1 %v5188_v47  ;;  %v5278_v47 = vld [vmem:[#allocation8 + $0xf4] ss:$8 sps:$4 sm:$0xff]  }
 0x1a5   :  { %2657 = vmatmul.mubr.bf16.vlgmr.msra.gmra.mrb[0].mxu0 %v5899_v30 }
 0x1a6   :  { %2821 = vmatmul.mubr.bf16.vlgmr.msra.gmra.mrb[0].mxu1 %v5899_v30  ;;  %2830 = vmatpush1.bf16.msra.mxu0 %v5069_v31  ;;  %v5125_v31 = vld [vmem:[#allocation5 + $0x374] ss:$24 sps:$4 sm:$0xff]  }
 0x1a7   :  { %2861 = vmatprep.mubr.bf16.mxu0 %v5871_v48  ;;  %2831 = vmatprep.subr.bf16.mxu0 %v5074_v33  ;;  %v5092_v48 = vld [vmem:[#allocation5 + $0x164] ss:$24 sps:$4 sm:$0xff]   ;;  %v5123_v33 = vld [vmem:[#allocation5 + $0x370] ss:$24 sps:$4 sm:$0xff]  }
 0x1a8   :  { %3600 = vmatpush1.bf16.msra.mxu1 %v5186_v46  ;;  %v5135_v46 = vld [vmem:[#allocation5 + $0x430] ss:$24 sps:$4 sm:$0xff]  }
 0x1a9   :  { %3601 = vmatprep.subr.bf16.mxu1 %v5194_v52  ;;  %v5284_v52 = vld [vmem:[#allocation8 + $0x104] ss:$8 sps:$4 sm:$0xff]  }
 0x1aa   :  { %2832 = vmatpush1.bf16.msra.mxu0 %v5072_v34  ;;  %v5252_v34 = vld [vmem:[#allocation8 + $0xb0] ss:$8 sps:$4 sm:$0xff]  }
 0x1ab   :  { %2833 = vmatprep.subr.bf16.mxu0 %v5077_v35  ;;  %v5254_v35 = vld [vmem:[#allocation8 + $0xb4] ss:$8 sps:$4 sm:$0xff]  }
 0x1ac   :  { %3602 = vmatpush1.bf16.msra.mxu1 %v5192_v51  ;;  %v5138_v51 = vld [vmem:[#allocation5 + $0x460] ss:$24 sps:$4 sm:$0xff]  }
 0x1ad   :  { %3603 = vmatprep.subr.bf16.mxu1 %v5200_v56  ;;  %v5144_v56 = vld [vmem:[#allocation5 + $0x4c0] ss:$24 sps:$4 sm:$0xff]  }
 0x1ae   :  { %2834 = vmatpush1.bf16.msra.mxu0 %v5075_v36  ;;  %v5128_v36 = vld [vmem:[#allocation5 + $0x3a4] ss:$24 sps:$4 sm:$0xff]  }
 0x1af   :  { %2835 = vmatprep.subr.bf16.mxu0 %v5080_v37  ;;  %v5258_v37 = vld [vmem:[#allocation8 + $0xc0] ss:$8 sps:$4 sm:$0xff]  }
 0x1b0   :  { %3604 = vmatpush1.bf16.msra.mxu1 %v5198_v55  ;;  %v5146_v55 = vld [vmem:[#allocation5 + $0x4c4] ss:$24 sps:$4 sm:$0xff]  }
 0x1b1   :  { %3605 = vmatprep.subr.bf16.mxu1 %v5206_v60  ;;  %v5150_v60 = vld [vmem:[#allocation5 + $0x520] ss:$24 sps:$4 sm:$0xff]  }
 0x1b2   :  { %2836 = vmatpush1.bf16.msra.mxu0 %v5078_v38  ;;  %v5260_v38 = vld [vmem:[#allocation8 + $0xc4] ss:$8 sps:$4 sm:$0xff]  }
 0x1b3   :  { %2837 = vmatprep.subr.bf16.mxu0 %v5083_v39  ;;  %v5129_v39 = vld [vmem:[#allocation5 + $0x3d0] ss:$24 sps:$4 sm:$0xff]  }
 0x1b4   :  { %3606 = vmatpush1.bf16.msra.mxu1 %v5204_v59  ;;  %v5152_v59 = vld [vmem:[#allocation5 + $0x524] ss:$24 sps:$4 sm:$0xff]  }
 0x1b5   :  { %3607 = vmatprep.subr.bf16.mxu1 %v5212_v0  ;;  %v5156_v0 = vld [vmem:[#allocation5 + $0x580] ss:$24 sps:$4 sm:$0xff]  }
 0x1b6   :  { %2838 = vmatpush1.bf16.msra.mxu0 %v5081_v40  ;;  %v5264_v40 = vld [vmem:[#allocation8 + $0xd0] ss:$8 sps:$4 sm:$0xff]  }
 0x1b7   :  { %2839 = vmatprep.subr.bf16.mxu0 %v5086_v41  ;;  %v5266_v41 = vld [vmem:[#allocation8 + $0xd4] ss:$8 sps:$4 sm:$0xff]  }
 0x1b8   :  { %3608 = vmatpush1.bf16.msra.mxu1 %v5210_v63  ;;  %v5158_v63 = vld [vmem:[#allocation5 + $0x584] ss:$24 sps:$4 sm:$0xff]  }
 0x1b9   :  { %3609 = vmatprep.subr.bf16.mxu1 %v5218_v4  ;;  %v5162_v4 = vld [vmem:[#allocation5 + $0x5e0] ss:$24 sps:$4 sm:$0xff]  }
 0x1ba   :  { %2840 = vmatpush1.bf16.msra.mxu0 %v5084_v42  ;;  %v5134_v42 = vld [vmem:[#allocation5 + $0x404] ss:$24 sps:$4 sm:$0xff]  }
 0x1bb   :  { %2841 = vmatprep.subr.bf16.mxu0 %v5089_v43  ;;  %v5132_v43 = vld [vmem:[#allocation5 + $0x400] ss:$24 sps:$4 sm:$0xff]  }
 0x1bc   :  { %3610 = vmatpush1.bf16.msra.mxu1 %v5216_v3  ;;  %v5164_v3 = vld [vmem:[#allocation5 + $0x5e4] ss:$24 sps:$4 sm:$0xff]  }
 0x1bd   :  { %3611 = vmatprep.subr.bf16.mxu1 %v5224_v9  ;;  %v5168_v9 = vld [vmem:[#allocation5 + $0x640] ss:$24 sps:$4 sm:$0xff]  }
 0x1be   :  { %2842 = vmatpush1.bf16.msra.mxu0 %v5087_v44  ;;  %v5272_v44 = vld [vmem:[#allocation8 + $0xe4] ss:$8 sps:$4 sm:$0xff]  }
 0x1bf   :  { %2843 = vmatprep.subr.bf16.mxu0 %v5092_v48  ;;  %v5137_v48 = vld [vmem:[#allocation5 + $0x434] ss:$24 sps:$4 sm:$0xff]  }
 0x1c0   :  { %3612 = vmatpush1.bf16.msra.mxu1 %v5222_v8  ;;  %v5170_v8 = vld [vmem:[#allocation5 + $0x644] ss:$24 sps:$4 sm:$0xff]  }
 0x1c1   :  { %3613 = vmatprep.subr.bf16.mxu1 %v5230_v14  ;;  %v5174_v14 = vld [vmem:[#allocation5 + $0x6a0] ss:$24 sps:$4 sm:$0xff]  }
 0x1c2   :  { %2844 = vmatpush1.bf16.msra.mxu0 %v5090_v45  ;;  %v5270_v45 = vld [vmem:[#allocation8 + $0xe0] ss:$8 sps:$4 sm:$0xff]  }
 0x1c3   :  { %2845 = vmatprep.subr.bf16.mxu0 %v5095_v49  ;;  %v5140_v49 = vld [vmem:[#allocation5 + $0x464] ss:$24 sps:$4 sm:$0xff]  }
 0x1c4   :  { %3614 = vmatpush1.bf16.msra.mxu1 %v5228_v12  ;;  %v5176_v12 = vld [vmem:[#allocation5 + $0x6a4] ss:$24 sps:$4 sm:$0xff]  }
 0x1c5   :  { %3615 = vmatprep.subr.bf16.mxu1 %v5236_v19  ;;  %v5185_v19 = vld [vmem:[#allocation5 + $0x734] ss:$24 sps:$4 sm:$0xff]  }
 0x1c6   :  { %2846 = vmatpush1.bf16.msra.mxu0 %v5093_v50  ;;  %v5276_v50 = vld [vmem:[#allocation8 + $0xf0] ss:$8 sps:$4 sm:$0xff]  }
 0x1c7   :  { %2847 = vmatprep.subr.bf16.mxu0 %v5098_v53  ;;  %v5143_v53 = vld [vmem:[#allocation5 + $0x494] ss:$24 sps:$4 sm:$0xff]  }
 0x1c8   :  { %3616 = vmatpush1.bf16.msra.mxu1 %v5234_v18  ;;  %v5182_v18 = vld [vmem:[#allocation5 + $0x704] ss:$24 sps:$4 sm:$0xff]  }
 0x1c9   :  { %3617 = vmatprep.subr.bf16.mxu1 %v5242_v24  ;;  %v5195_v24 = vld [vmem:[#allocation5 + $0x790] ss:$24 sps:$4 sm:$0xff]  }
 0x1ca   :  { %2848 = vmatpush1.bf16.msra.mxu0 %v5096_v54  ;;  %v5141_v54 = vld [vmem:[#allocation5 + $0x490] ss:$24 sps:$4 sm:$0xff]  }
 0x1cb   :  { %2849 = vmatprep.subr.bf16.mxu0 %v5101_v57  ;;  %v5149_v57 = vld [vmem:[#allocation5 + $0x4f4] ss:$24 sps:$4 sm:$0xff]  }
 0x1cc   :  { %3618 = vmatpush1.bf16.msra.mxu1 %v5240_v23  ;;  %v5197_v23 = vld [vmem:[#allocation5 + $0x794] ss:$24 sps:$4 sm:$0xff]  }
 0x1cd   :  { %3619 = vmatprep.subr.bf16.mxu1 %v5248_v29  ;;  %v5207_v29 = vld [vmem:[#allocation5 + $0x7f0] ss:$24 sps:$4 sm:$0xff]  }
 0x1ce   :  { %2850 = vmatpush1.bf16.msra.mxu0 %v5099_v58  ;;  %v5147_v58 = vld [vmem:[#allocation5 + $0x4f0] ss:$24 sps:$4 sm:$0xff]  }
 0x1cf   :  { %2851 = vmatprep.subr.bf16.mxu0 %v5104_v61  ;;  %v5155_v61 = vld [vmem:[#allocation5 + $0x554] ss:$24 sps:$4 sm:$0xff]  }
 0x1d0   :  { %3620 = vmatpush1.bf16.msra.mxu1 %v5246_v28  ;;  %v5209_v28 = vld [vmem:[#allocation5 + $0x7f4] ss:$24 sps:$4 sm:$0xff]  }
 0x1d1   :  { %3621 = vmatprep.subr.bf16.mxu1 %v5254_v35  ;;  %v5219_v35 = vld [vmem:[#allocation5 + $0x850] ss:$24 sps:$4 sm:$0xff]  }
 0x1d2   :  { %2852 = vmatpush1.bf16.msra.mxu0 %v5102_v62  ;;  %v5153_v62 = vld [vmem:[#allocation5 + $0x550] ss:$24 sps:$4 sm:$0xff]  }
 0x1d3   :  { %2853 = vmatprep.subr.bf16.mxu0 %v5107_v1  ;;  %v5161_v1 = vld [vmem:[#allocation5 + $0x5b4] ss:$24 sps:$4 sm:$0xff]  }
 0x1d4   :  { %3622 = vmatpush1.bf16.msra.mxu1 %v5252_v34  ;;  %v5221_v34 = vld [vmem:[#allocation5 + $0x854] ss:$24 sps:$4 sm:$0xff]  }
 0x1d5   :  { %3623 = vmatprep.subr.bf16.mxu1 %v5260_v38  ;;  %v5231_v38 = vld [vmem:[#allocation5 + $0x8b0] ss:$24 sps:$4 sm:$0xff]  }
 0x1d6   :  { %2854 = vmatpush1.bf16.msra.mxu0 %v5105_v2  ;;  %v5159_v2 = vld [vmem:[#allocation5 + $0x5b0] ss:$24 sps:$4 sm:$0xff]  }
 0x1d7   :  { %2855 = vmatprep.subr.bf16.mxu0 %v5110_v6  ;;  %v5167_v6 = vld [vmem:[#allocation5 + $0x614] ss:$24 sps:$4 sm:$0xff]  }
 0x1d8   :  { %3624 = vmatpush1.bf16.msra.mxu1 %v5258_v37  ;;  %v5233_v37 = vld [vmem:[#allocation5 + $0x8b4] ss:$24 sps:$4 sm:$0xff]  }
 0x1d9   :  { %3625 = vmatprep.subr.bf16.mxu1 %v5266_v41  ;;  %v5243_v41 = vld [vmem:[#allocation5 + $0x910] ss:$24 sps:$4 sm:$0xff]  }
 0x1da   :  { %2856 = vmatpush1.bf16.msra.mxu0 %v5108_v7  ;;  %v5165_v7 = vld [vmem:[#allocation5 + $0x610] ss:$24 sps:$4 sm:$0xff]  }
 0x1db   :  { %2857 = vmatprep.subr.bf16.mxu0 %v5113_v10  ;;  %v5173_v10 = vld [vmem:[#allocation5 + $0x674] ss:$24 sps:$4 sm:$0xff]  }
 0x1dc   :  { %3626 = vmatpush1.bf16.msra.mxu1 %v5264_v40  ;;  %v5245_v40 = vld [vmem:[#allocation5 + $0x914] ss:$24 sps:$4 sm:$0xff]  }
 0x1dd   :  { %3627 = vmatprep.subr.bf16.mxu1 %v5272_v44  ;;  %v5257_v44 = vld [vmem:[#allocation5 + $0x974] ss:$24 sps:$4 sm:$0xff]  }
 0x1de   :  { %2858 = vmatpush1.bf16.msra.mxu0 %v5111_v11  ;;  %v5171_v11 = vld [vmem:[#allocation5 + $0x670] ss:$24 sps:$4 sm:$0xff]  }
 0x1df   :  { %2859 = vmatprep.subr.bf16.mxu0 %v5116_v15  ;;  %v5179_v15 = vld [vmem:[#allocation5 + $0x6d4] ss:$24 sps:$4 sm:$0xff]  }
 0x1e0   :  { %3628 = vmatpush1.bf16.msra.mxu1 %v5270_v45  ;;  %v5255_v45 = vld [vmem:[#allocation5 + $0x970] ss:$24 sps:$4 sm:$0xff]  }
 0x1e1   :  { %3629 = vmatprep.subr.bf16.mxu1 %v5278_v47 }
 0x1e2   :  { %2860 = vmatpush1.bf16.msra.mxu0 %v5114_v16  ;;  %v5177_v16 = vld [vmem:[#allocation5 + $0x6d0] ss:$24 sps:$4 sm:$0xff]  }
 0x1e3   :  { %2870 = vmatprep.subr.bf16.mxu0 %v5119_v20  ;;  %v5191_v20 = vld [vmem:[#allocation5 + $0x764] ss:$24 sps:$4 sm:$0xff]  }
 0x1e4   :  { %3630 = vmatpush1.bf16.msra.mxu1 %v5276_v50  ;;  %v5269_v50 = vld [vmem:[#allocation5 + $0x9d4] ss:$24 sps:$4 sm:$0xff]  }
 0x1e5   :  { %2862 = vmatmul.mubr.bf16.vlgmr.msra.gmra.mrb[4].mxu0 %v5875_v5  ;;  %v5126_v5 = vld [vmem:[#allocation5 + $0x3a0] ss:$24 sps:$4 sm:$0xff]   ;;  %3640 = vmatprep.subr.bf16.mxu1 %v5284_v52  ;;  %v5267_v52 = vld [vmem:[#allocation5 + $0x9d0] ss:$24 sps:$4 sm:$0xff]  }
 0x1e6   :  { %2871 = vmatpush1.bf16.msra.mxu0 %v5117_v21  ;;  %2902 = vmatprep.mubr.bf16.mxu0 %v5879_v32  ;;  %v5131_v32 = vld [vmem:[#allocation5 + $0x3d4] ss:$24 sps:$4 sm:$0xff]   ;;  %v5189_v21 = vld [vmem:[#allocation5 + $0x760] ss:$24 sps:$4 sm:$0xff]  }
 0x1e7   :  { %2872 = vmatprep.subr.bf16.mxu0 %v5122_v25  ;;  %v5203_v25 = vld [vmem:[#allocation5 + $0x7c4] ss:$24 sps:$4 sm:$0xff]  }
 0x1ea   :  { %2873 = vmatpush1.bf16.msra.mxu0 %v5120_v27  ;;  %v5201_v27 = vld [vmem:[#allocation5 + $0x7c0] ss:$24 sps:$4 sm:$0xff]  }
 0x1eb   :  { %2874 = vmatprep.subr.bf16.mxu0 %v5125_v31  ;;  %v5215_v31 = vld [vmem:[#allocation5 + $0x824] ss:$24 sps:$4 sm:$0xff]  }
 0x1ee   :  { %2875 = vmatpush1.bf16.msra.mxu0 %v5123_v33  ;;  %v5213_v33 = vld [vmem:[#allocation5 + $0x820] ss:$24 sps:$4 sm:$0xff]  }
 0x1ef   :  { %2876 = vmatprep.subr.bf16.mxu0 %v5128_v36  ;;  %v5227_v36 = vld [vmem:[#allocation5 + $0x884] ss:$24 sps:$4 sm:$0xff]  }
 0x1f2   :  { %2877 = vmatpush1.bf16.msra.mxu0 %v5126_v5  ;;  %v5225_v5 = vld [vmem:[#allocation5 + $0x880] ss:$24 sps:$4 sm:$0xff]  }
 0x1f3   :  { %2878 = vmatprep.subr.bf16.mxu0 %v5131_v32  ;;  %v5239_v32 = vld [vmem:[#allocation5 + $0x8e4] ss:$24 sps:$4 sm:$0xff]  }
 0x1f6   :  { %2879 = vmatpush1.bf16.msra.mxu0 %v5129_v39  ;;  %v5237_v39 = vld [vmem:[#allocation5 + $0x8e0] ss:$24 sps:$4 sm:$0xff]  }
 0x1f7   :  { %2880 = vmatprep.subr.bf16.mxu0 %v5134_v42  ;;  %v5251_v42 = vld [vmem:[#allocation5 + $0x944] ss:$24 sps:$4 sm:$0xff]  }
 0x1fa   :  { %2881 = vmatpush1.bf16.msra.mxu0 %v5132_v43  ;;  %v5249_v43 = vld [vmem:[#allocation5 + $0x940] ss:$24 sps:$4 sm:$0xff]  }
 0x1fb   :  { %2882 = vmatprep.subr.bf16.mxu0 %v5137_v48  ;;  %v551_v48 = vlaneseq }
 0x1fd   :  { %v5910_v47 = vshrl.u32 %v551_v48, 7  ;;  %v5318_v48 = vld [vmem:[#allocation8 + $0x160] ss:$8 sps:$4 sm:$0xff]  }
 0x1fe   :  { %2883 = vmatpush1.bf16.msra.mxu0 %v5135_v46  ;;  %v5263_v46 = vld [vmem:[#allocation5 + $0x9a4] ss:$24 sps:$4 sm:$0xff]  }
 0x1ff   :  { %2884 = vmatprep.subr.bf16.mxu0 %v5140_v49  ;;  %v5261_v49 = vld [vmem:[#allocation5 + $0x9a0] ss:$24 sps:$4 sm:$0xff]  }
 0x202   :  { %2885 = vmatpush1.bf16.msra.mxu0 %v5138_v51  ;;  %v553_v51 = vsub.s32 0, %v5910_v47 }
 0x203   :  { %2886 = vmatprep.subr.bf16.mxu0 %v5143_v53  ;;  %v557_v53 = vsub.s32 1, %v5910_v47 }
 0x206   :  { %2887 = vmatpush1.bf16.msra.mxu0 %v5141_v54  ;;  %v565_v54 = vsub.s32 3, %v5910_v47 }
 0x207   :  { %2888 = vmatprep.subr.bf16.mxu0 %v5146_v55  ;;  %v5275_v55 = vld [vmem:[#allocation5 + $0xa04] ss:$24 sps:$4 sm:$0xff]  }
 0x20a   :  { %2889 = vmatpush1.bf16.msra.mxu0 %v5144_v56 }
 0x20b   :  { %2890 = vmatprep.subr.bf16.mxu0 %v5149_v57 }
 0x20e   :  { %2891 = vmatpush1.bf16.msra.mxu0 %v5147_v58 }
 0x20f   :  { %2892 = vmatprep.subr.bf16.mxu0 %v5152_v59 }
 0x212   :  { %2893 = vmatpush1.bf16.msra.mxu0 %v5150_v60  ;;  %v5273_v60 = vld [vmem:[#allocation5 + $0xa00] ss:$24 sps:$4 sm:$0xff]  }
 0x213   :  { %2894 = vmatprep.subr.bf16.mxu0 %v5155_v61  ;;  %v5281_v61 = vld [vmem:[#allocation5 + $0xa34] ss:$24 sps:$4 sm:$0xff]  }
 0x216   :  { %2895 = vmatpush1.bf16.msra.mxu0 %v5153_v62 }
 0x217   :  { %2896 = vmatprep.subr.bf16.mxu0 %v5158_v63 }
 0x21a   :  { %2897 = vmatpush1.bf16.msra.mxu0 %v5156_v0 }
 0x21b   :  { %2898 = vmatprep.subr.bf16.mxu0 %v5161_v1 }
 0x21e   :  { %2899 = vmatpush1.bf16.msra.mxu0 %v5159_v2 }
 0x21f   :  { %2900 = vmatprep.subr.bf16.mxu0 %v5164_v3 }
 0x222   :  { %2901 = vmatpush1.bf16.msra.mxu0 %v5162_v4 }
 0x223   :  { %2911 = vmatprep.subr.bf16.mxu0 %v5167_v6 }
 0x225   :  { %2903 = vmatmul.mubr.bf16.vlgmr.msra.gmra.mrb[4].mxu0 %v5883_v13  ;;  %v5180_v13 = vld [vmem:[#allocation5 + $0x700] ss:$24 sps:$4 sm:$0xff]  }
 0x226   :  { %2912 = vmatpush1.bf16.msra.mxu0 %v5165_v7  ;;  %2943 = vmatprep.mubr.bf16.mxu0 %v5885_v17  ;;  %v5183_v17 = vld [vmem:[#allocation5 + $0x730] ss:$24 sps:$4 sm:$0xff]  }
 0x227   :  { %2913 = vmatprep.subr.bf16.mxu0 %v5170_v8 }
 0x22a   :  { %2914 = vmatpush1.bf16.msra.mxu0 %v5168_v9  ;;  %v5279_v9 = vld [vmem:[#allocation5 + $0xa30] ss:$24 sps:$4 sm:$0xff]  }
 0x22b   :  { %2915 = vmatprep.subr.bf16.mxu0 %v5173_v10 }
 0x22e   :  { %2916 = vmatpush1.bf16.msra.mxu0 %v5171_v11 }
 0x22f   :  { %2917 = vmatprep.subr.bf16.mxu0 %v5176_v12 }
 0x232   :  { %2918 = vmatpush1.bf16.msra.mxu0 %v5174_v14  ;;  %v5287_v14 = vld [vmem:[#allocation5 + $0xa64] ss:$24 sps:$4 sm:$0xff]  }
 0x233   :  { %2919 = vmatprep.subr.bf16.mxu0 %v5179_v15 }
 0x236   :  { %2920 = vmatpush1.bf16.msra.mxu0 %v5177_v16 }
 0x237   :  { %2921 = vmatprep.subr.bf16.mxu0 %v5182_v18 }
 0x23a   :  { %2922 = vmatpush1.bf16.msra.mxu0 %v5180_v13  ;;  %v5282_v13 = vld [vmem:[#allocation8 + $0x100] ss:$8 sps:$4 sm:$0xff]  }
 0x23b   :  { %2923 = vmatprep.subr.bf16.mxu0 %v5185_v19  ;;  %v5285_v19 = vld [vmem:[#allocation5 + $0xa60] ss:$24 sps:$4 sm:$0xff]  }
 0x23e   :  { %2924 = vmatpush1.bf16.msra.mxu0 %v5183_v17 }
 0x23f   :  { %2925 = vmatprep.subr.bf16.mxu0 %v5191_v20 }
 0x242   :  { %2926 = vmatpush1.bf16.msra.mxu0 %v5189_v21  ;;  %v5290_v21 = vld [vmem:[#allocation8 + $0x114] ss:$8 sps:$4 sm:$0xff]  }
 0x243   :  { %2927 = vmatprep.subr.bf16.mxu0 %v5197_v23  ;;  %v5293_v23 = vld [vmem:[#allocation5 + $0xa94] ss:$24 sps:$4 sm:$0xff]  }
 0x246   :  { %2928 = vmatpush1.bf16.msra.mxu0 %v5195_v24  ;;  %v5288_v24 = vld [vmem:[#allocation8 + $0x110] ss:$8 sps:$4 sm:$0xff]  }
 0x247   :  { %2929 = vmatprep.subr.bf16.mxu0 %v5203_v25  ;;  %v5291_v25 = vld [vmem:[#allocation5 + $0xa90] ss:$24 sps:$4 sm:$0xff]  }
 0x24a   :  { %2930 = vmatpush1.bf16.msra.mxu0 %v5201_v27  ;;  %v5296_v27 = vld [vmem:[#allocation8 + $0x124] ss:$8 sps:$4 sm:$0xff]  }
 0x24b   :  { %2931 = vmatprep.subr.bf16.mxu0 %v5209_v28  ;;  %v5299_v28 = vld [vmem:[#allocation5 + $0xac4] ss:$24 sps:$4 sm:$0xff]  }
 0x24e   :  { %2932 = vmatpush1.bf16.msra.mxu0 %v5207_v29  ;;  %v5294_v29 = vld [vmem:[#allocation8 + $0x120] ss:$8 sps:$4 sm:$0xff]  }
 0x24f   :  { %2933 = vmatprep.subr.bf16.mxu0 %v5215_v31  ;;  %v5297_v31 = vld [vmem:[#allocation5 + $0xac0] ss:$24 sps:$4 sm:$0xff]  }
 0x252   :  { %2934 = vmatpush1.bf16.msra.mxu0 %v5213_v33  ;;  %v5302_v33 = vld [vmem:[#allocation8 + $0x134] ss:$8 sps:$4 sm:$0xff]  }
 0x253   :  { %2935 = vmatprep.subr.bf16.mxu0 %v5221_v34  ;;  %v5305_v34 = vld [vmem:[#allocation5 + $0xaf4] ss:$24 sps:$4 sm:$0xff]  }
 0x256   :  { %2936 = vmatpush1.bf16.msra.mxu0 %v5219_v35  ;;  %v5300_v35 = vld [vmem:[#allocation8 + $0x130] ss:$8 sps:$4 sm:$0xff]  }
 0x257   :  { %2937 = vmatprep.subr.bf16.mxu0 %v5227_v36  ;;  %v5303_v36 = vld [vmem:[#allocation5 + $0xaf0] ss:$24 sps:$4 sm:$0xff]  }
 0x25a   :  { %2938 = vmatpush1.bf16.msra.mxu0 %v5225_v5  ;;  %v5308_v5 = vld [vmem:[#allocation8 + $0x144] ss:$8 sps:$4 sm:$0xff]  }
 0x25b   :  { %2939 = vmatprep.subr.bf16.mxu0 %v5233_v37  ;;  %v5311_v37 = vld [vmem:[#allocation5 + $0xb24] ss:$24 sps:$4 sm:$0xff]  }
 0x25e   :  { %2940 = vmatpush1.bf16.msra.mxu0 %v5231_v38  ;;  %v5306_v38 = vld [vmem:[#allocation8 + $0x140] ss:$8 sps:$4 sm:$0xff]  }
 0x25f   :  { %2941 = vmatprep.subr.bf16.mxu0 %v5239_v32  ;;  %v5309_v32 = vld [vmem:[#allocation5 + $0xb20] ss:$24 sps:$4 sm:$0xff]  }
 0x262   :  { %2942 = vmatpush1.bf16.msra.mxu0 %v5237_v39  ;;  %v5314_v39 = vld [vmem:[#allocation8 + $0x154] ss:$8 sps:$4 sm:$0xff]  }
 0x263   :  { %2952 = vmatprep.subr.bf16.mxu0 %v5245_v40  ;;  %v5317_v40 = vld [vmem:[#allocation5 + $0xb54] ss:$24 sps:$4 sm:$0xff]  }
 0x265   :  { %2944 = vmatmul.mubr.bf16.vlgmr.msra.gmra.mrb[4].mxu0 %v5891_v22  ;;  %v561_v22 = vsub.s32 2, %v5910_v47 }
 0x266   :  { %2953 = vmatpush1.bf16.msra.mxu0 %v5243_v41  ;;  %2984 = vmatprep.mubr.bf16.mxu0 %v5893_v26  ;;  %v5914_v26 = vld [vmem:[#allocation7] sm:$0x3f] }
 0x267   :  { %2954 = vmatprep.subr.bf16.mxu0 %v5251_v42  ;;  %v554_v56 = vrot.slane %v5914_v26, %v553_v51  ;;  %v562_v57 = vrot.slane %v5914_v26, %v561_v22  ;;  %v558_v58 = vrot.slane %v5914_v26, %v557_v53  ;;  %v566_v59 = vrot.slane %v5914_v26, %v565_v54  ;;  %v5312_v41 = vld [vmem:[#allocation8 + $0x150] ss:$8 sps:$4 sm:$0xff]   ;;  %v5315_v42 = vld [vmem:[#allocation5 + $0xb50] ss:$24 sps:$4 sm:$0xff]  }
 0x268   :  { %v5327_v22 = vld [vmem:[#allocation5 + $0xbb0] ss:$24 sps:$4 sm:$0xff]   ;;  %v5335_v54 = vld [vmem:[#allocation5 + $0xbe4] ss:$24 sps:$4 sm:$0xff]  }
 0x26a   :  { %2955 = vmatpush1.bf16.msra.mxu0 %v5249_v43  ;;  %v5320_v43 = vld [vmem:[#allocation8 + $0x164] ss:$8 sps:$4 sm:$0xff]  }
 0x26b   :  { %2956 = vmatprep.subr.bf16.mxu0 %v5257_v44  ;;  %v5323_v44 = vld [vmem:[#allocation5 + $0xb84] ss:$24 sps:$4 sm:$0xff]  }
 0x26e   :  { %2957 = vmatpush1.bf16.msra.mxu0 %v5255_v45  ;;  %v5321_v45 = vld [vmem:[#allocation5 + $0xb80] ss:$24 sps:$4 sm:$0xff]  }
 0x26f   :  { %2958 = vmatprep.subr.bf16.mxu0 %v5263_v46  ;;  %v5326_v46 = vld [vmem:[#allocation8 + $0x174] ss:$8 sps:$4 sm:$0xff]  }
 0x272   :  { %2959 = vmatpush1.bf16.msra.mxu0 %v5261_v49  ;;  %v5329_v49 = vld [vmem:[#allocation5 + $0xbb4] ss:$24 sps:$4 sm:$0xff]  }
 0x273   :  { %2960 = vmatprep.subr.bf16.mxu0 %v5269_v50  ;;  %v5324_v50 = vld [vmem:[#allocation8 + $0x170] ss:$8 sps:$4 sm:$0xff]  }
 0x276   :  { %2961 = vmatpush1.bf16.msra.mxu0 %v5267_v52  ;;  %v5332_v52 = vld [vmem:[#allocation8 + $0x184] ss:$8 sps:$4 sm:$0xff]  }
 0x277   :  { %2962 = vmatprep.subr.bf16.mxu0 %v5275_v55  ;;  %v5330_v55 = vld [vmem:[#allocation8 + $0x180] ss:$8 sps:$4 sm:$0xff]  }
 0x278   :  { %v2658_v62 = vpop.f32.mrb[0].mxu0 }
 0x279   :  { %v2822_v63 = vpop.f32.mrb[0].mxu1  ;;  %v4614_v0 = vadd.f32 %v2658_v62, %v554_v56  ;;  %v2660_v2 = vpop.f32.mrb[1].mxu0  ;;  %v5333_v56 = vld [vmem:[#allocation5 + $0xbe0] ss:$24 sps:$4 sm:$0xff]  }
 0x27a   :  { %v5926_v1 = vadd.f32 %v2822_v63, %v562_v57  ;;  %v2824_v3 = vpop.f32.mrb[1].mxu1  ;;  %v4615_v4 = vadd.f32 %v2660_v2, %v558_v58  ;;  %v2662_v7 = vpop.f32.mrb[2].mxu0  ;;  %2963 = vmatpush1.bf16.msra.mxu0 %v5273_v60  ;;  %v5338_v57 = vld [vmem:[#allocation8 + $0x194] ss:$8 sps:$4 sm:$0xff]   ;;  %v5336_v58 = vld [vmem:[#allocation8 + $0x190] ss:$8 sps:$4 sm:$0xff]  }
 0x27b   :  { %v4617_v6 = vadd.f32 %v2824_v3, %v566_v59  ;;  %v2826_v8 = vpop.f32.mrb[2].mxu1  ;;  %2993 = vst [vmem:[#allocation18] sm:$0xff] %v4614_v0  ;;  %v2999_v10 = vmax.f32 %v4614_v0, 0.0  ;;  %v2663_v11 = vpop.f32.mrb[3].mxu0  ;;  %2964 = vmatprep.subr.bf16.mxu0 %v5281_v61  ;;  %v5341_v59 = vld [vmem:[#allocation8 + $0x1a4] ss:$8 sps:$4 sm:$0xff]  }
 0x27c   :  { %2995 = vst [vmem:[#allocation18 + $0x10] sm:$0xff] %v5926_v1  ;;  %v2827_v12 = vpop.f32.mrb[3].mxu1  ;;  %2994 = vst [vmem:[#allocation18 + $0x8] sm:$0xff] %v4615_v4  ;;  %v3000_v15 = vmax.f32 %v4615_v4, 0.0  ;;  %v5339_v60 = vld [vmem:[#allocation8 + $0x1a0] ss:$8 sps:$4 sm:$0xff]  }
 0x27d   :  { %2996 = vst [vmem:[#allocation18 + $0x18] sm:$0xff] %v4617_v6  ;;  %v3002_v16 = vmax.f32 %v4617_v6, 0.0  ;;  %v3005_v17 = vpack.c.bf16 %v2999_v10, %v2999_v10  ;;  %v5344_v61 = vld [vmem:[#allocation8 + $0x1b4] ss:$8 sps:$4 sm:$0xff]   ;;  %v5342_v62 = vld [vmem:[#allocation8 + $0x1b0] ss:$8 sps:$4 sm:$0xff]  }
 0x27e   :  { %v3006_v18 = vpack.c.bf16 %v3000_v15, %v3000_v15  ;;  %2965 = vmatpush1.bf16.msra.mxu0 %v5279_v9  ;;  %v5347_v63 = vld [vmem:[#allocation8 + $0x1c4] ss:$8 sps:$4 sm:$0xff]   ;;  %v5345_v0 = vld [vmem:[#allocation8 + $0x1c0] ss:$8 sps:$4 sm:$0xff]   ;;  %v5350_v2 = vld [vmem:[#allocation8 + $0x1d4] ss:$8 sps:$4 sm:$0xff]  }
 0x27f   :  { %v3008_v20 = vpack.c.bf16 %v3002_v16, %v3002_v16  ;;  %2966 = vmatprep.subr.bf16.mxu0 %v5287_v14  ;;  %v5348_v3 = vld [vmem:[#allocation8 + $0x1d0] ss:$8 sps:$4 sm:$0xff]   ;;  %v5353_v4 = vld [vmem:[#allocation8 + $0x1e4] ss:$8 sps:$4 sm:$0xff]   ;;  %v5351_v6 = vld [vmem:[#allocation8 + $0x1e0] ss:$8 sps:$4 sm:$0xff]  }
 0x280   :  { %3631 = vmatprep.mubr.bf16.mxu1 %v3006_v18  ;;  %v5354_v7 = vld [vmem:[#allocation8 + $0x1f0] ss:$8 sps:$4 sm:$0xff]   ;;  %v3001_v8 = vmax.f32 %v5926_v1, 0.0  ;;  %v5359_v9 = vld [vmem:[#allocation8 + $0x204] ss:$8 sps:$4 sm:$0xff]  }
 0x281   :  { %3632 = vmatmul.mubr.bf16.vlgmr.msra.gmra.mrb[4].mxu1 %v3005_v17  ;;  %v5357_v10 = vld [vmem:[#allocation8 + $0x200] ss:$8 sps:$4 sm:$0xff]   ;;  %v5362_v12 = vld [vmem:[#allocation8 + $0x214] ss:$8 sps:$4 sm:$0xff]   ;;  %v5360_v14 = vld [vmem:[#allocation8 + $0x210] ss:$8 sps:$4 sm:$0xff]  }
 0x282   :  { %3641 = vmatpush1.bf16.msra.mxu1 %v5282_v13  ;;  %2967 = vmatpush1.bf16.msra.mxu0 %v5285_v19  ;;  %v3007_v11 = vpack.c.bf16 %v3001_v8, %v3001_v8  ;;  %v5365_v15 = vld [vmem:[#allocation8 + $0x224] ss:$8 sps:$4 sm:$0xff]   ;;  %v5363_v16 = vld [vmem:[#allocation8 + $0x220] ss:$8 sps:$4 sm:$0xff]   ;;  %v5368_v18 = vld [vmem:[#allocation8 + $0x234] ss:$8 sps:$4 sm:$0xff]  }
 0x283   :  { %3672 = vmatprep.mubr.bf16.mxu1 %v3008_v20  ;;  %3642 = vmatprep.subr.bf16.mxu1 %v5290_v21  ;;  %v5366_v13 = vld [vmem:[#allocation8 + $0x230] ss:$8 sps:$4 sm:$0xff]   ;;  %v5371_v1 = vld [vmem:[#allocation8 + $0x244] ss:$8 sps:$4 sm:$0xff]   ;;  %v5369_v19 = vld [vmem:[#allocation8 + $0x240] ss:$8 sps:$4 sm:$0xff]  }
 0x284   :  { %2968 = vmatprep.subr.bf16.mxu0 %v5293_v23  ;;  %v5374_v17 = vld [vmem:[#allocation8 + $0x254] ss:$8 sps:$4 sm:$0xff]   ;;  %v5372_v20 = vld [vmem:[#allocation8 + $0x250] ss:$8 sps:$4 sm:$0xff]   ;;  %v5377_v21 = vld [vmem:[#allocation8 + $0x264] ss:$8 sps:$4 sm:$0xff]  }
 0x285   :  { %v5375_v23 = vld [vmem:[#allocation8 + $0x260] ss:$8 sps:$4 sm:$0xff]   ;;  %v5418_v8 = vld [vmem:[#allocation11 + $0x30] sm:$0xff]  }
 0x286   :  { %3643 = vmatpush1.bf16.msra.mxu1 %v5288_v24  ;;  %2969 = vmatpush1.bf16.msra.mxu0 %v5291_v25  ;;  %v5380_v24 = vld [vmem:[#allocation8 + $0x274] ss:$8 sps:$4 sm:$0xff]   ;;  %v5378_v25 = vld [vmem:[#allocation8 + $0x270] ss:$8 sps:$4 sm:$0xff]  }
 0x287   :  { %3644 = vmatprep.subr.bf16.mxu1 %v5296_v27  ;;  %2970 = vmatprep.subr.bf16.mxu0 %v5299_v28  ;;  %v5383_v27 = vld [vmem:[#allocation8 + $0x284] ss:$8 sps:$4 sm:$0xff]   ;;  %v5381_v28 = vld [vmem:[#allocation8 + $0x280] ss:$8 sps:$4 sm:$0xff]  }
 0x28a   :  { %3645 = vmatpush1.bf16.msra.mxu1 %v5294_v29  ;;  %2971 = vmatpush1.bf16.msra.mxu0 %v5297_v31  ;;  %v5386_v29 = vld [vmem:[#allocation8 + $0x294] ss:$8 sps:$4 sm:$0xff]   ;;  %v5384_v31 = vld [vmem:[#allocation8 + $0x290] ss:$8 sps:$4 sm:$0xff]  }
 0x28b   :  { %3646 = vmatprep.subr.bf16.mxu1 %v5302_v33  ;;  %2972 = vmatprep.subr.bf16.mxu0 %v5305_v34  ;;  %v5389_v33 = vld [vmem:[#allocation8 + $0x2a4] ss:$8 sps:$4 sm:$0xff]   ;;  %v5387_v34 = vld [vmem:[#allocation8 + $0x2a0] ss:$8 sps:$4 sm:$0xff]  }
 0x28e   :  { %3647 = vmatpush1.bf16.msra.mxu1 %v5300_v35  ;;  %2973 = vmatpush1.bf16.msra.mxu0 %v5303_v36  ;;  %v5392_v35 = vld [vmem:[#allocation8 + $0x2b4] ss:$8 sps:$4 sm:$0xff]   ;;  %v5390_v36 = vld [vmem:[#allocation8 + $0x2b0] ss:$8 sps:$4 sm:$0xff]  }
 0x28f   :  { %3648 = vmatprep.subr.bf16.mxu1 %v5308_v5  ;;  %2974 = vmatprep.subr.bf16.mxu0 %v5311_v37  ;;  %v5395_v5 = vld [vmem:[#allocation8 + $0x2c4] ss:$8 sps:$4 sm:$0xff]   ;;  %v5393_v37 = vld [vmem:[#allocation8 + $0x2c0] ss:$8 sps:$4 sm:$0xff]  }
 0x292   :  { %3649 = vmatpush1.bf16.msra.mxu1 %v5306_v38  ;;  %2975 = vmatpush1.bf16.msra.mxu0 %v5309_v32  ;;  %v5398_v38 = vld [vmem:[#allocation8 + $0x2d4] ss:$8 sps:$4 sm:$0xff]   ;;  %v5396_v32 = vld [vmem:[#allocation8 + $0x2d0] ss:$8 sps:$4 sm:$0xff]  }
 0x293   :  { %3650 = vmatprep.subr.bf16.mxu1 %v5314_v39  ;;  %2976 = vmatprep.subr.bf16.mxu0 %v5317_v40  ;;  %v5401_v39 = vld [vmem:[#allocation8 + $0x2e4] ss:$8 sps:$4 sm:$0xff]   ;;  %v5399_v40 = vld [vmem:[#allocation8 + $0x2e0] ss:$8 sps:$4 sm:$0xff]  }
 0x296   :  { %3651 = vmatpush1.bf16.msra.mxu1 %v5312_v41  ;;  %2977 = vmatpush1.bf16.msra.mxu0 %v5315_v42  ;;  %v5404_v41 = vld [vmem:[#allocation8 + $0x2f4] ss:$8 sps:$4 sm:$0xff]   ;;  %v5402_v42 = vld [vmem:[#allocation8 + $0x2f0] ss:$8 sps:$4 sm:$0xff]  }
 0x297   :  { %3652 = vmatprep.subr.bf16.mxu1 %v5320_v43  ;;  %2978 = vmatprep.subr.bf16.mxu0 %v5323_v44  ;;  %v5405_v43 = vld [vmem:[#allocation11 + $0x40] sm:$0xff]   ;;  %v569_v44 = vsub.s32 4, %v5910_v47 }
 0x29a   :  { %3653 = vmatpush1.bf16.msra.mxu1 %v5318_v48  ;;  %2979 = vmatpush1.bf16.msra.mxu0 %v5321_v45  ;;  %v573_v48 = vsub.s32 5, %v5910_v47  ;;  %v570_v45 = vrot.slane %v5914_v26, %v569_v44  ;;  %v5424_v47 = vld [vmem:[#allocation14 + $0x18] sm:$0xff]  }
 0x29b   :  { %3654 = vmatprep.subr.bf16.mxu1 %v5326_v46  ;;  %2980 = vmatprep.subr.bf16.mxu0 %v5329_v49 }
 0x29c   :  { %v574_v46 = vrot.slane %v5914_v26, %v573_v48  ;;  %v5409_v26 = vld [vmem:[#allocation11 + $0x50] sm:$0xff]  }
 0x29e   :  { %3655 = vmatpush1.bf16.msra.mxu1 %v5324_v50  ;;  %2981 = vmatpush1.bf16.msra.mxu0 %v5327_v22 }
 0x29f   :  { %3656 = vmatprep.subr.bf16.mxu1 %v5332_v52  ;;  %2982 = vmatprep.subr.bf16.mxu0 %v5335_v54 }
 0x2a2   :  { %3657 = vmatpush1.bf16.msra.mxu1 %v5330_v55  ;;  %2983 = vmatpush1.bf16.msra.mxu0 %v5333_v56 }
 0x2a3   :  { %3658 = vmatprep.subr.bf16.mxu1 %v5338_v57 }
 0x2a5   :  { %2985 = vmatmul.mubr.bf16.vlgmr.msra.gmra.mrb[4].mxu0 %v5899_v30  ;;  %v5356_v30 = vld [vmem:[#allocation8 + $0x1f4] ss:$8 sps:$4 sm:$0xff]  }
 0x2a6   :  { %3659 = vmatpush1.bf16.msra.mxu1 %v5336_v58 }
 0x2a7   :  { %3660 = vmatprep.subr.bf16.mxu1 %v5341_v59  ;;  %v5406_v59 = vld [vmem:[#allocation11] sm:$0xff]  }
 0x2aa   :  { %3661 = vmatpush1.bf16.msra.mxu1 %v5339_v60 }
 0x2ab   :  { %3662 = vmatprep.subr.bf16.mxu1 %v5344_v61  ;;  %v5407_v61 = vld [vmem:[#allocation11 + $0x48] sm:$0xff]  }
 0x2ae   :  { %3663 = vmatpush1.bf16.msra.mxu1 %v5342_v62  ;;  %v5408_v62 = vld [vmem:[#allocation11 + $0x8] sm:$0xff]  }
 0x2af   :  { %3664 = vmatprep.subr.bf16.mxu1 %v5347_v63  ;;  %v5410_v63 = vld [vmem:[#allocation11 + $0x10] sm:$0xff]  }
 0x2b2   :  { %3665 = vmatpush1.bf16.msra.mxu1 %v5345_v0  ;;  %v5411_v0 = vld [vmem:[#allocation11 + $0x58] sm:$0xff]  }
 0x2b3   :  { %3666 = vmatprep.subr.bf16.mxu1 %v5350_v2  ;;  %v5412_v2 = vld [vmem:[#allocation11 + $0x18] sm:$0xff]  }
 0x2b6   :  { %3667 = vmatpush1.bf16.msra.mxu1 %v5348_v3  ;;  %v5413_v3 = vld [vmem:[#allocation11 + $0x60] sm:$0xff]  }
 0x2b7   :  { %3668 = vmatprep.subr.bf16.mxu1 %v5353_v4  ;;  %v5414_v4 = vld [vmem:[#allocation11 + $0x20] sm:$0xff]  }
 0x2ba   :  { %3669 = vmatpush1.bf16.msra.mxu1 %v5351_v6  ;;  %v5415_v6 = vld [vmem:[#allocation11 + $0x68] sm:$0xff]  }
 0x2bb   :  { %3670 = vmatprep.subr.bf16.mxu1 %v5356_v30  ;;  %v5416_v30 = vld [vmem:[#allocation11 + $0x28] sm:$0xff]  }
 0x2be   :  { %3671 = vmatpush1.bf16.msra.mxu1 %v5354_v7  ;;  %v5417_v7 = vld [vmem:[#allocation11 + $0x70] sm:$0xff]  }
 0x2bf   :  { %3681 = vmatprep.subr.bf16.mxu1 %v5359_v9  ;;  %v5419_v9 = vld [vmem:[#allocation11 + $0x78] sm:$0xff]  }
 0x2c1   :  { %3673 = vmatmul.mubr.bf16.vlgmr.msra.gmra.mrb[4].mxu1 %v3007_v11  ;;  %v5704_v11 = vmov 0.0  }
 0x2c2   :  { %3682 = vmatpush1.bf16.msra.mxu1 %v5357_v10  ;;  %v5420_v10 = vld [vmem:[#allocation11 + $0x38] sm:$0xff]  }
 0x2c3   :  { %3683 = vmatprep.subr.bf16.mxu1 %v5362_v12  ;;  %v3107_v12 = vld [vmem:[#allocation10] sm:$0x3] }
 0x2c6   :  { %3684 = vmatpush1.bf16.msra.mxu1 %v5360_v14  ;;  %v3112_v14 = vrot.slane %v3107_v12, %v553_v51  ;;  %v5423_v51 = vld [vmem:[#allocation14 + $0x10] sm:$0xff]  }
 0x2c7   :  { %3685 = vmatprep.subr.bf16.mxu1 %v5365_v15  ;;  %v3116_v15 = vrot.slane %v3107_v12, %v557_v53  ;;  %v5425_v53 = vld [vmem:[#allocation14 + $0x20] sm:$0xff]  }
 0x2ca   :  { %3686 = vmatpush1.bf16.msra.mxu1 %v5363_v16 }
 0x2cb   :  { %3687 = vmatprep.subr.bf16.mxu1 %v5368_v18 }
 0x2ce   :  { %3688 = vmatpush1.bf16.msra.mxu1 %v5366_v13 }
 0x2cf   :  { %3689 = vmatprep.subr.bf16.mxu1 %v5371_v1 }
 0x2d2   :  { %3690 = vmatpush1.bf16.msra.mxu1 %v5369_v19 }
 0x2d3   :  { %3691 = vmatprep.subr.bf16.mxu1 %v5374_v17 }
 0x2d6   :  { %3692 = vmatpush1.bf16.msra.mxu1 %v5372_v20 }
 0x2d7   :  { %3693 = vmatprep.subr.bf16.mxu1 %v5377_v21 }
 0x2da   :  { %3694 = vmatpush1.bf16.msra.mxu1 %v5375_v23 }
 0x2db   :  { %3695 = vmatprep.subr.bf16.mxu1 %v5380_v24  ;;  %v5421_v24 = vld [vmem:[#allocation14] sm:$0xff]  }
 0x2de   :  { %3696 = vmatpush1.bf16.msra.mxu1 %v5378_v25 }
 0x2df   :  { %3697 = vmatprep.subr.bf16.mxu1 %v5383_v27  ;;  %v5422_v27 = vld [vmem:[#allocation14 + $0x8] sm:$0xff]  }
 0x2e2   :  { %3698 = vmatpush1.bf16.msra.mxu1 %v5381_v28  ;;  %v5426_v28 = vld [vmem:[#allocation14 + $0x28] sm:$0xff]  }
 0x2e3   :  { %3699 = vmatprep.subr.bf16.mxu1 %v5386_v29  ;;  %v5427_v29 = vld [vmem:[#allocation14 + $0x30] sm:$0xff]  }
 0x2e6   :  { %3700 = vmatpush1.bf16.msra.mxu1 %v5384_v31  ;;  %v5428_v31 = vld [vmem:[#allocation14 + $0x38] sm:$0xff]  }
 0x2e7   :  { %3701 = vmatprep.subr.bf16.mxu1 %v5389_v33 }
 0x2ea   :  { %3702 = vmatpush1.bf16.msra.mxu1 %v5387_v34  ;;  %v4537_v34 = vld [vmem:[#allocation13] ss:$0 sm:$0xff] }
 0x2eb   :  { %3703 = vmatprep.subr.bf16.mxu1 %v5392_v35 }
 0x2ee   :  { %3704 = vmatpush1.bf16.msra.mxu1 %v5390_v36 }
 0x2ef   :  { %3705 = vmatprep.subr.bf16.mxu1 %v5395_v5 }
 0x2f2   :  { %3706 = vmatpush1.bf16.msra.mxu1 %v5393_v37 }
 0x2f3   :  { %3707 = vmatprep.subr.bf16.mxu1 %v5398_v38 }
 0x2f6   :  { %3708 = vmatpush1.bf16.msra.mxu1 %v5396_v32 }
 0x2f7   :  { %3709 = vmatprep.subr.bf16.mxu1 %v5401_v39 }
 0x2fa   :  { %3710 = vmatpush1.bf16.msra.mxu1 %v5399_v40  ;;  %v4554_v40 = vld [vmem:[#allocation16] ss:$0 sm:$0xff] }
 0x2fb   :  { %3711 = vmatprep.subr.bf16.mxu1 %v5404_v41 }
 0x2fe   :  { %3712 = vmatpush1.bf16.msra.mxu1 %v5402_v42 }
 0x2ff   :  { %4563 = vmatprep.subr.bf16.mxu1 %v5405_v43 }
 0x378   :  { %v2986_v49 = vpop.f32.mrb[4].mxu0 }
 0x379   :  { %v4618_v50 = vadd.f32 %v2986_v49, %v570_v45  ;;  %v2988_v22 = vpop.f32.mrb[5].mxu0 }
 0x37a   :  { %v4619_v52 = vadd.f32 %v2988_v22, %v574_v46  ;;  %v2990_v54 = vpop.f32.mrb[6].mxu0 }
 0x37b   :  { %2997 = vst [vmem:[#allocation18 + $0x20] sm:$0xff] %v4618_v50  ;;  %v3003_v55 = vmax.f32 %v4618_v50, 0.0  ;;  %v2991_v56 = vpop.f32.mrb[7].mxu0 }
 0x37c   :  { %2998 = vst [vmem:[#allocation18 + $0x28] sm:$0xff] %v4619_v52  ;;  %v3004_v57 = vmax.f32 %v4619_v52, 0.0 }
 0x37d   :  { %v3009_v60 = vpack.c.bf16 %v3003_v55, %v3003_v55 }
 0x37e   :  { %v3010_v58 = vpack.c.bf16 %v3004_v57, %v3004_v57 }
 0x380   :  { %3713 = vmatprep.mubr.bf16.mxu1 %v3010_v58 }
 0x381   :  { %3714 = vmatmul.mubr.bf16.vlgmr.msra.gmra.mrb[4].mxu1 %v3009_v60 }
 0x382   :  { %4564 = vmatpush3.bf16.msra.mxu1 %v5406_v59 }
 0x383   :  { %4565 = vmatprep.subr.bf16.mxu1 %v5407_v61 }
 0x386   :  { %4566 = vmatpush3.bf16.msra.mxu1 %v5408_v62 }
 0x387   :  { %4567 = vmatprep.subr.bf16.mxu1 %v5409_v26 }
 0x38a   :  { %4568 = vmatpush3.bf16.msra.mxu1 %v5410_v63 }
 0x38b   :  { %4569 = vmatprep.subr.bf16.mxu1 %v5411_v0 }
 0x38e   :  { %4570 = vmatpush3.bf16.msra.mxu1 %v5412_v2 }
 0x38f   :  { %4571 = vmatprep.subr.bf16.mxu1 %v5413_v3 }
 0x392   :  { %4572 = vmatpush3.bf16.msra.mxu1 %v5414_v4 }
 0x393   :  { %4573 = vmatprep.subr.bf16.mxu1 %v5415_v6 }
 0x396   :  { %4574 = vmatpush3.bf16.msra.mxu1 %v5416_v30 }
 0x397   :  { %4575 = vmatprep.subr.bf16.mxu1 %v5417_v7 }
 0x39a   :  { %4576 = vmatpush3.bf16.msra.mxu1 %v5418_v8 }
 0x39b   :  { %4577 = vmatprep.subr.bf16.mxu1 %v5419_v9 }
 0x39e   :  { %4578 = vmatpush3.bf16.msra.mxu1 %v5420_v10 }
 0x39f   :  { %4594 = vmatprep.subr.bf16.mxu1 %v5704_v11 }
 0x454   :  { %v3715_v16 = vpop.f32.mrb[4].mxu1 }
 0x455   :  { %v4620_v18 = vadd.f32 %v3715_v16, %v3112_v14  ;;  %v3717_v13 = vpop.f32.mrb[5].mxu1 }
 0x456   :  { %v4621_v1 = vadd.f32 %v3717_v13, %v3116_v15  ;;  %v3719_v19 = vpop.f32.mrb[6].mxu1 }
 0x457   :  { %v3722_v17 = vmax.f32 %v4620_v18, 0.0  ;;  %v3720_v20 = vpop.f32.mrb[7].mxu1 }
 0x458   :  { %v3723_v21 = vmax.f32 %v4621_v1, 0.0 }
 0x459   :  { %v3724_v25 = vpack.c.bf16 %v3722_v17, %v3722_v17 }
 0x45a   :  { %v3725_v23 = vpack.c.bf16 %v3723_v21, %v3723_v21 }
 0x45c   :  { %3893 = vmatprep.mubr.bf16.mxu1 %v3725_v23 }
 0x45d   :  { %3894 = vmatmul.mubr.bf16.vlgmr.msra.gmra.mrb[8].mxu1 %v3724_v25 }
 0x45e   :  { %4595 = vmatpush3.bf16.msra.mxu1 %v5421_v24  ;;  %4610 = vmatprep.mubr.msk.bf16.mxu1 %vm5705_vm0, %v5704_v11 }
 0x45f   :  { %4596 = vmatprep.subr.bf16.mxu1 %v5704_v11 }
 0x462   :  { %4597 = vmatpush3.bf16.msra.mxu1 %v5422_v27 }
 0x463   :  { %4598 = vmatprep.subr.bf16.mxu1 %v5704_v11 }
 0x466   :  { %4599 = vmatpush3.bf16.msra.mxu1 %v5423_v51 }
 0x467   :  { %4600 = vmatprep.subr.bf16.mxu1 %v5704_v11 }
 0x46a   :  { %4601 = vmatpush3.bf16.msra.mxu1 %v5424_v47 }
 0x46b   :  { %4602 = vmatprep.subr.bf16.mxu1 %v5704_v11 }
 0x46e   :  { %4603 = vmatpush3.bf16.msra.mxu1 %v5425_v53 }
 0x46f   :  { %4604 = vmatprep.subr.bf16.mxu1 %v5704_v11 }
 0x472   :  { %4605 = vmatpush3.bf16.msra.mxu1 %v5426_v28 }
 0x473   :  { %4606 = vmatprep.subr.bf16.mxu1 %v5704_v11 }
 0x476   :  { %4607 = vmatpush3.bf16.msra.mxu1 %v5427_v29 }
 0x477   :  { %4608 = vmatprep.subr.bf16.mxu1 %v5704_v11 }
 0x47a   :  { %4609 = vmatpush3.bf16.msra.mxu1 %v5428_v31 }
 0x530   :  { %v4579_v33 = vpop.f32.mrb[8].mxu1 }
 0x531   :  { %v4580_v35 = vpop.f32.mrb[9].mxu1 }
 0x532   :  { %v4581_v36 = vadd.f32 %v4580_v35, %v4579_v33  ;;  %v4582_v5 = vpop.f32.mrb[10].mxu1 }
 0x533   :  { %v4583_v37 = vpop.f32.mrb[11].mxu1 }
 0x534   :  { %v3896_v38 = vadd.f32 %v4581_v36, %v4537_v34 }
 0x536   :  { %v3901_v32 = vmax.f32 %v3896_v38, 0.0 }
 0x538   :  { %v3902_v39 = vpack.c.bf16 %v3901_v32, %v3901_v32 }
 0x53a   :  { %4611 = vmatmul.mubr.bf16.vlgmr.msra.gmra.mrb[12].mxu1 %v3902_v39 }
 0x60d   :  { %v4008_v41 = vpop.f32.mrb[12].mxu1 }
 0x60e   :  { %v4009_v42 = vadd.f32 %v4554_v40, %v4008_v41  ;;  %v4612_v43 = vpop.f32.mrb[13].mxu1 }
 0x60f   :  { %v4011_v44 = vpop.f32.mrb[14].mxu1 }
 0x610   :  { %4014 = vmax.xlane.f32.xlu0 %v4009_v42  ;;  %v4613_v48 = vpop.f32.mrb[15].mxu1 }
 0x69d   :  { %v4015_v45 = vpop.xlane.xlu0 %4014 }
 0x69e   :  { %v4016_v46 = vsub.f32 %v4009_v42, %v4015_v45 }
 0x6a0   :  { %v4017_v49 = vmul.f32 1.442695, %v4016_v46 }
 0x6a2   :  { %5429 = vpow2.f32 %v4017_v49 }
 0x6ac   :  { %v5430_v50 = vpop.eup %5429 }
 0x6ad   :  { %4019 = vadd.xlane.f32.xlu0 %v5430_v50 }
 0x6ae   :  { %5642 = shalt.err (!%p5639_p6)
}
 0x6af   :  { %s5643_s28 = scalar_lea.hbm %s5973_s10, 768 }
 0x6b0   :  { %p5644_p7 = scmp.ne.s32.totalorder %s5973_s10, %s5643_s28  ;;  %p5647_p8 = scmp.lt.u32.totalorder %s5643_s28, %s5973_s10 }
 0x6b2   :  { %p5649_p9 = pnand %p5647_p8, %p5644_p7 }
 0x6b4   :  { %5652 = shalt.err (!%p5649_p9)
}
 0x6b5   :  { %4043 = dma.vmem_to_hbm [thread:$0]  %s4041_s2, 768, %s5973_s10, [#allocation19]  }
 0x6b6   :  { %s5707_s22 = smov [#allocation17]  }
 0x6b7   :  { %s4030_s23 = sshll.u32 %s5707_s22, 4  ;;  %s4031_s23 = int_to_ptr.vmem [resolvable:$true] %s4030_s23 }
 0x6b8   :  { %s5653_s4 = scalar_lea.vmem %s4031_s23, 128  ;;  %p5658_p11 = scmp.lt.s32.totalorder %s4031_s23, %s4031_s23 }
 0x6b9   :  { %p5654_p10 = scmp.ne.s32.totalorder %s4031_s23, %s5653_s4  ;;  %p5659_p12 = scmp.lt.s32.totalorder %s5653_s4, %s5653_s4 }
 0x6bb   :  { %p5660_p13 = por %p5659_p12, %p5658_p11 }
 0x6bd   :  { %p5661_p0 = pnand %p5660_p13, %p5654_p10 }
 0x73a   :  { %v4020_v22 = vpop.xlane.xlu0 %4019 }
 0x73b   :  { %5431 = vrcp.f32 %v4020_v22 }
 0x745   :  { %v5432_v52 = vpop.eup %5431 }
 0x746   :  { %v4022_v54 = vmul.f32 %v5432_v52, %v5430_v50 }
 0x748   :  { %4023 = vst [vmem:[#allocation17] sm:$0xff] %v4022_v54 }
 0x749   :  { %5664 = shalt.err (!%p5661_p0)
}
 0x74a   :  { %s5665_s0 = scalar_lea.hbm %s5972_s9, 128 }
 0x74b   :  { %p5666_p1 = scmp.ne.s32.totalorder %s5972_s9, %s5665_s0  ;;  %p5669_p2 = scmp.lt.u32.totalorder %s5665_s0, %s5972_s9 }
 0x74d   :  { %p5671_p3 = pnand %p5669_p2, %p5666_p1 }
 0x74f   :  { %5674 = shalt.err (!%p5671_p3)
}
 0x750   :  { %4033 = dma.vmem_to_hbm [thread:$0]  %s4031_s23, 128, %s5972_s9, [#allocation4]  }
 0x751   :  { %5685 = dma.done.wait [#allocation4], 128  }
 0x752   :  { %5686 = vsyncadd [#allocation4], 4294967168 }
 0x753   :  { %5687 = dma.done.wait [#allocation19], 768  }
 0x754   :  { %5688 = vsyncadd [#allocation19], 4294966528 }
 0x755   :  { %4050 = vsyncpa [#allocation3], 1 }
 0x756   :  { %4051 = vsyncpa [#allocation6], 1 }
 0x757   :  { %4052 = vsyncpa [#allocation9], 1 }
 0x758   :  { %4053 = vsyncpa [#allocation12], 1 }
 0x759   :  { %4054 = vsyncpa [#allocation15], 1 }
 0x75a   :  { %4055 = vsyncpa [#allocation4], 1 }
 0x75b   :  { %4056 = vsyncpa [#allocation19], 1 }

</bundles_post_ra>
